<compile_context>
chip_gen: v6e
topology: v6e:2x2x1
jax: 0.10.0
libtpu: 0.0.40
codegen_flags: <defaults>
</compile_context>

<pallas_src>
import functools

import jax
import jax.numpy as jnp
from jax import lax
from jax.experimental import pallas as pl
from jax.experimental.pallas import tpu as pltpu

BN_EPS = 1e-5


# ----------------------------------------------------------------------------
# Generation-aware knobs
# ----------------------------------------------------------------------------
@functools.lru_cache(maxsize=None)
def _vmem_limit_bytes():
    """~70% of physical VMEM (128 MiB on v5e/v6e, 64 MiB on v7x), capped."""
    cap = 0
    try:
        cap = int(getattr(pltpu.get_tpu_info(), "vmem_capacity_bytes", 0) or 0)
    except Exception:
        cap = 0
    if cap <= 0:
        cap = 64 * 1024 * 1024  # conservative default (v7x physical VMEM)
    return min(int(cap * 0.7), 112 * 1024 * 1024)


def _compiler_params(sem):
    return pltpu.CompilerParams(dimension_semantics=sem,
                                vmem_limit_bytes=_vmem_limit_bytes())


def _row_tile(m, bytes_per_row, target=4 << 20):
    """Largest row tile dividing m within a per-buffer VMEM budget.

    Prefers multiples of 8 (sublane alignment) when tiling; never returns an
    unbounded block unless the whole extent already fits the budget.
    """
    if m * bytes_per_row <= target:
        return m
    best = 1
    for t in range(8, m, 8):
        if m % t == 0 and t * bytes_per_row <= target:
            best = t
    if best == 1:
        for t in range(1, m):
            if m % t == 0 and t * bytes_per_row <= target:
                best = t
    return best


# ----------------------------------------------------------------------------
# Conv 3x3 (padding=1, bias=False), stride handled in-kernel, bf16 MXU math,
# bf16 output + f32 per-batch BN partial sums. Optional fused BN+ReLU prologue.
# ----------------------------------------------------------------------------
def _conv_body(xb, w_ref, y_ref, psum_ref, psq_ref, stride, Ho, Wo):
    """xb: (H, W, Cin) bf16 activation tile (unpadded)."""
    H, W, Cin = xb.shape
    Cout = y_ref.shape[3]

    # Halo pad in VMEM (zero 1-px border) -- no extra HBM round trip.
    zc = jnp.zeros((H, 1, Cin), jnp.bfloat16)
    xb = jnp.concatenate([zc, xb, zc], axis=1)          # (H, W+2, Cin)
    zr = jnp.zeros((1, W + 2, Cin), jnp.bfloat16)
    xb = jnp.concatenate([zr, xb, zr], axis=0)          # (H+2, W+2, Cin)

    # im2col taps; row subsample hoisted out of the kw loop for stride > 1.
    taps = []
    for kh in range(3):
        rows = xb[kh:kh + stride * Ho, :, :]
        if stride > 1:
            rows = rows.reshape(Ho, stride, W + 2, Cin)[:, 0]
        for kw in range(3):
            cols = rows[:, kw:kw + stride * Wo, :]
            if stride > 1:
                cols = cols.reshape(Ho, Wo, stride, Cin)[:, :, 0]
            taps.append(cols.reshape(Ho * Wo, Cin))

    if Cin >= 128:
        # Per-tap accumulation: K=Cin already fills the MXU; avoids the big
        # (Ho*Wo, 9*Cin) patches buffer and unaligned concat offsets.
        acc = jnp.zeros((Ho * Wo, Cout), jnp.float32)
        for t, tap in enumerate(taps):
            acc = acc + jnp.dot(tap, w_ref[t * Cin:(t + 1) * Cin, :],
                                preferred_element_type=jnp.float32)
    else:
        patches = jnp.concatenate(taps, axis=1)          # (Ho*Wo, 9*Cin) bf16
        acc = jnp.dot(patches, w_ref[...],
                      preferred_element_type=jnp.float32)

    y_ref[0] = acc.reshape(Ho, Wo, Cout).astype(y_ref.dtype)
    # f32 partial sums for BatchNorm stats (single pass; values are O(1) so
    # E[x^2]-E[x]^2 in f32 is adequate here).
    psum_ref[0] = jnp.sum(acc, axis=0, keepdims=True)
    psq_ref[0] = jnp.sum(acc * acc, axis=0, keepdims=True)


def _conv3x3_kernel(x_ref, w_ref, y_ref, psum_ref, psq_ref, *, stride, Ho, Wo):
    _conv_body(x_ref[0].astype(jnp.bfloat16), w_ref, y_ref, psum_ref, psq_ref,
               stride, Ho, Wo)


def _bnrelu_conv3x3_kernel(x_ref, scale_ref, shift_ref, w_ref,
                           y_ref, psum_ref, psq_ref, *, stride, Ho, Wo):
    # Fused bn1-apply + ReLU prologue (f32 math), then the conv.
    x = x_ref[0].astype(jnp.float32)
    x = jnp.maximum(x * scale_ref[...] + shift_ref[...], 0.0)
    _conv_body(x.astype(jnp.bfloat16), w_ref, y_ref, psum_ref, psq_ref,
               stride, Ho, Wo)


def conv3x3(x, w, stride, bn_scale=None, bn_shift=None):
    """x: (N,H,W,Cin); w: (3,3,Cin,Cout) f32.

    Returns (y bf16 (N,Ho,Wo,Cout), psum f32 (N,1,Cout), psq f32 (N,1,Cout)).
    If bn_scale/bn_shift are given, y_out = conv(relu(x*scale + shift)).
    """
    N, H, W, Cin = x.shape
    Cout = w.shape[-1]
    Ho, Wo = H // stride, W // stride
    w2d = w.reshape(9 * Cin, Cout).astype(jnp.bfloat16)   # tap-major, matches taps

    x_spec = pl.BlockSpec((1, H, W, Cin), lambda n: (n, 0, 0, 0))
    w_spec = pl.BlockSpec((9 * Cin, Cout), lambda n: (0, 0))
    out_shape = (jax.ShapeDtypeStruct((N, Ho, Wo, Cout), jnp.bfloat16),
                 jax.ShapeDtypeStruct((N, 1, Cout), jnp.float32),
                 jax.ShapeDtypeStruct((N, 1, Cout), jnp.float32))
    out_specs = (pl.BlockSpec((1, Ho, Wo, Cout), lambda n: (n, 0, 0, 0)),
                 pl.BlockSpec((1, 1, Cout), lambda n: (n, 0, 0)),
                 pl.BlockSpec((1, 1, Cout), lambda n: (n, 0, 0)))
    cp = _compiler_params(("parallel",))

    if bn_scale is None:
        kern = functools.partial(_conv3x3_kernel, stride=stride, Ho=Ho, Wo=Wo)
        return pl.pallas_call(kern, out_shape=out_shape, grid=(N,),
                              in_specs=[x_spec, w_spec], out_specs=out_specs,
                              compiler_params=cp)(x, w2d)
    vec_spec = pl.BlockSpec((1, Cin), lambda n: (0, 0))
    kern = functools.partial(_bnrelu_conv3x3_kernel, stride=stride, Ho=Ho, Wo=Wo)
    return pl.pallas_call(kern, out_shape=out_shape, grid=(N,),
                          in_specs=[x_spec, vec_spec, vec_spec, w_spec],
                          out_specs=out_specs,
                          compiler_params=cp)(x, bn_scale, bn_shift, w2d)


# ----------------------------------------------------------------------------
# BatchNorm affine (training-mode batch stats) from the conv partial sums.
# ----------------------------------------------------------------------------
def _bn_affine(psum, psq, gamma, beta, count):
    mean = jnp.sum(psum, axis=0) / count                          # (1, C)
    var = jnp.maximum(jnp.sum(psq, axis=0) / count - mean * mean, 0.0)
    scale = gamma * lax.rsqrt(var + BN_EPS)
    shift = beta - mean * scale
    return scale, shift


# ----------------------------------------------------------------------------
# bn2-apply + residual add + ReLU epilogue kernels.
# ----------------------------------------------------------------------------
def _bn_add_relu_kernel(y_ref, scale_ref, shift_ref, res_ref, o_ref):
    # Packed lane-dense layout: last dim is W*C (>=128 for real ResNet shapes).
    yn = y_ref[...].astype(jnp.float32) * scale_ref[...] + shift_ref[...]
    o_ref[...] = jnp.maximum(yn + res_ref[...].astype(jnp.float32),
                             0.0).astype(o_ref.dtype)


def _bn_pool_add_relu_kernel(y_ref, scale_ref, shift_ref, x_ref, o_ref):
    # Shortcut path: 2x2 AvgPool of the raw input + zero-channel extension,
    # fused with bn2 apply / add / ReLU. Spatial layout (last dim = C); for
    # real downsample blocks C >= 128 so stores stay lane-dense.
    C = y_ref.shape[3]
    th, Wo = y_ref.shape[1], y_ref.shape[2]
    Cin = x_ref.shape[3]
    yn = y_ref[0].astype(jnp.float32) * scale_ref[...] + shift_ref[...]  # (th,Wo,C)
    x = x_ref[0].astype(jnp.float32)                                     # (2th,2Wo,Cin)
    x = x.reshape(th, 2, 2 * Wo, Cin)
    xr = (x[:, 0] + x[:, 1]) * 0.5                                       # row-pair avg
    x4 = xr.reshape(th, Wo, 2, Cin)
    r = (x4[:, :, 0] + x4[:, :, 1]) * 0.5                                # (th,Wo,Cin)
    # torch.cat((res, res*0), 1): zero-extend channels in-register.
    r = jnp.concatenate([r, jnp.zeros((th, Wo, C - Cin), jnp.float32)], axis=-1)
    o_ref[0] = jnp.maximum(yn + r, 0.0).astype(o_ref.dtype)


def bn2_residual_relu(y, scale, shift, residual, *, shortcut):
    """y: (N,Ho,Wo,C) bf16 conv2 output; scale/shift: (1,C);
    residual: raw block input x (N,H,W,Cin) f32."""
    N, Ho, Wo, C = y.shape

    if not shortcut:
        assert residual.shape == y.shape, (residual.shape, y.shape)
        M, L = N * Ho, Wo * C
        tm = _row_tile(M, 16 * L)
        y2 = y.reshape(M, L)
        r2 = residual.reshape(M, L)
        scale_p = jnp.tile(scale, (1, Wo))                # packed (1, Wo*C)
        shift_p = jnp.tile(shift, (1, Wo))
        row_spec = pl.BlockSpec((tm, L), lambda i: (i, 0))
        vec_spec = pl.BlockSpec((1, L), lambda i: (0, 0))
        out2 = pl.pallas_call(
            _bn_add_relu_kernel,
            out_shape=jax.ShapeDtypeStruct((M, L), jnp.float32),
            grid=(M // tm,),
            in_specs=[row_spec, vec_spec, vec_spec, row_spec],
            out_specs=row_spec,
            compiler_params=_compiler_params(("parallel",)),
        )(y2, scale_p, shift_p, r2)
        return out2.reshape(N, Ho, Wo, C)

    Nr, H, W, Cin = residual.shape
    assert Nr == N and H == 2 * Ho and W == 2 * Wo, (residual.shape, y.shape)
    assert C == 2 * Cin, "shortcut assumes planes == 2*in_planes"
    th = _row_tile(Ho, 12 * Wo * C)
    y_spec = pl.BlockSpec((1, th, Wo, C), lambda n, r: (n, r, 0, 0))
    x_spec = pl.BlockSpec((1, 2 * th, W, Cin), lambda n, r: (n, r, 0, 0))
    vec_spec = pl.BlockSpec((1, C), lambda n, r: (0, 0))
    return pl.pallas_call(
        _bn_pool_add_relu_kernel,
        out_shape=jax.ShapeDtypeStruct((N, Ho, Wo, C), jnp.float32),
        grid=(N, Ho // th),
        in_specs=[y_spec, vec_spec, vec_spec, x_spec],
        out_specs=y_spec,
        compiler_params=_compiler_params(("parallel", "parallel")),
    )(y, scale, shift, residual)


# ----------------------------------------------------------------------------
# BasicBlock forward (Pallas)
# ----------------------------------------------------------------------------
def basic_block_forward(x_nchw, params, *, stride, shortcut):
    x = jnp.transpose(x_nchw, (0, 2, 3, 1))                      # NCHW -> NHWC
    N, H, W, Cin = x.shape
    Ho, Wo = H // stride, W // stride

    # conv1 (+ per-batch BN partial sums)
    y1, s1, q1 = conv3x3(x, params["w1"], stride)
    scale1, shift1 = _bn_affine(s1, q1, params["g1"], params["b1"], N * Ho * Wo)

    # bn1 + relu fused into conv2 as a prologue; conv2 emits its own partials.
    y2, s2, q2 = conv3x3(y1, params["w2"], 1, bn_scale=scale1, bn_shift=shift1)
    scale2, shift2 = _bn_affine(s2, q2, params["g2"], params["b2"], N * Ho * Wo)

    # bn2 + residual (identity, or fused avgpool + zero-channel extend) + relu
    out = bn2_residual_relu(y2, scale2, shift2, x, shortcut=bool(shortcut))
    return jnp.transpose(out, (0, 3, 1, 2))                      # NHWC -> NCHW


# ----------------------------------------------------------------------------
# Pure-JAX reference (same semantics as the PyTorch module in train mode)
# ----------------------------------------------------------------------------
def basic_block_ref(x_nchw, params, *, stride, shortcut):
    x = jnp.transpose(x_nchw, (0, 2, 3, 1))

    def conv(inp, w, s):
        return lax.conv_general_dilated(
            inp, w, (s, s), ((1, 1), (1, 1)),
            dimension_numbers=("NHWC", "HWIO", "NHWC"),
            precision=lax.Precision.HIGHEST)

    def bn(v, g, b):
        mean = jnp.mean(v, axis=(0, 1, 2), keepdims=True)
        var = jnp.mean((v - mean) ** 2, axis=(0, 1, 2), keepdims=True)
        return ((v - mean) * lax.rsqrt(var + BN_EPS) * g.reshape(1, 1, 1, -1)
                + b.reshape(1, 1, 1, -1))

    y = jax.nn.relu(bn(conv(x, params["w1"], stride), params["g1"], params["b1"]))
    y = bn(conv(y, params["w2"], 1), params["g2"], params["b2"])
    if shortcut:
        N, H, W, Cin = x.shape
        pooled = x.reshape(N, H // 2, 2, W // 2, 2, Cin).mean(axis=(2, 4))
        residual = jnp.concatenate([pooled, jnp.zeros_like(pooled)], axis=-1)
    else:
        residual = x
    return jnp.transpose(jax.nn.relu(y + residual), (0, 3, 1, 2))


def make_params(key, in_planes, planes):
    k1, k2, k3, k4, k5, k6 = jax.random.split(key, 6)
    return {
        "w1": jax.random.normal(k1, (3, 3, in_planes, planes), jnp.float32)
              / jnp.sqrt(9.0 * in_planes),
        "w2": jax.random.normal(k2, (3, 3, planes, planes), jnp.float32)
              / jnp.sqrt(9.0 * planes),
        "g1": 1.0 + 0.1 * jax.random.normal(k3, (1, planes), jnp.float32),
        "b1": 0.1 * jax.random.normal(k4, (1, planes), jnp.float32),
        "g2": 1.0 + 0.1 * jax.random.normal(k5, (1, planes), jnp.float32),
        "b2": 0.1 * jax.random.normal(k6, (1, planes), jnp.float32),
    }


if __name__ == "__main__":
    key = jax.random.PRNGKey(0)
    kx, kp1, kp2 = jax.random.split(key, 3)
    x = jax.random.normal(kx, (2, 4, 16, 16), jnp.float32)       # NCHW like PyTorch

    # Case 1: identity shortcut (in_planes=planes=4, stride=1, shortcut=0)
    p1 = make_params(kp1, 4, 4)
    out1 = basic_block_forward(x, p1, stride=1, shortcut=0)
    ref1 = basic_block_ref(x, p1, stride=1, shortcut=0)

    # Case 2: downsampling block (in_planes=4, planes=8, stride=2, shortcut=1)
    p2 = make_params(kp2, 4, 8)
    out2 = basic_block_forward(x, p2, stride=2, shortcut=1)
    ref2 = basic_block_ref(x, p2, stride=2, shortcut=1)

    jax.block_until_ready((out1, out2))
    assert out1.shape == (2, 4, 16, 16), out1.shape
    assert out2.shape == (2, 8, 8, 8), out2.shape
    # Tolerance accommodates bf16 MXU operands / bf16 intermediates vs. the
    # f32 HIGHEST-precision reference (intended contract).
    assert bool(jnp.allclose(out1, ref1, atol=5e-2, rtol=5e-2)), "case 1 mismatch"
    assert bool(jnp.allclose(out2, ref2, atol=5e-2, rtol=5e-2)), "case 2 mismatch"
    print("KERNEL_OK")
</pallas_src>

<mosaic_0001>
module attributes {stable_mosaic.version = 11 : i64} {
  func.func @_conv3x3_kernel(%arg0: i32, %arg1: memref<1x16x16x4xf32, #tpu.memory_space<vmem>>, %arg2: memref<36x4xbf16, #tpu.memory_space<vmem>>, %arg3: memref<1x16x16x4xbf16, #tpu.memory_space<vmem>>, %arg4: memref<1x1x4xf32, #tpu.memory_space<vmem>>, %arg5: memref<1x1x4xf32, #tpu.memory_space<vmem>>) attributes {dimension_semantics = [#tpu.dimension_semantics<parallel>], iteration_bounds = array<i64: 2>, scalar_prefetch = 0 : i64, scratch_operands = 0 : i64, tpu.core_type = #tpu.core_type<tc>, window_params = [{transform_indices = @transform_0, window_bounds = array<i64: 1, 16, 16, 4>}, {pipeline_mode = #tpu.pipeline_mode<synchronous>, transform_indices = @transform_1, window_bounds = array<i64: 36, 4>}, {transform_indices = @transform_2, window_bounds = array<i64: 1, 16, 16, 4>}, {transform_indices = @transform_3, window_bounds = array<i64: 1, 1, 4>}, {transform_indices = @transform_4, window_bounds = array<i64: 1, 1, 4>}]} {
    %c0 = arith.constant 0 : index
    %c0_0 = arith.constant 0 : index
    %c0_1 = arith.constant 0 : index
    %c0_2 = arith.constant 0 : index
    %0 = vector.load %arg1[%c0, %c0_0, %c0_1, %c0_2] : memref<1x16x16x4xf32, #tpu.memory_space<vmem>>, vector<1x16x16x4xf32>
    %1 = vector.shape_cast %0 : vector<1x16x16x4xf32> to vector<16x16x4xf32>
    %2 = arith.truncf %1 : vector<16x16x4xf32> to vector<16x16x4xbf16>
    %cst = arith.constant 0.000000e+00 : bf16
    %3 = vector.broadcast %cst : bf16 to vector<16x1x4xbf16>
    %4 = tpu.concatenate %3, %2, %3 in 1 : vector<16x1x4xbf16>, vector<16x16x4xbf16>, vector<16x1x4xbf16> -> vector<16x18x4xbf16>
    %cst_3 = arith.constant 0.000000e+00 : bf16
    %5 = vector.broadcast %cst_3 : bf16 to vector<1x18x4xbf16>
    %6 = tpu.concatenate %5, %4, %5 in 0 : vector<1x18x4xbf16>, vector<16x18x4xbf16>, vector<1x18x4xbf16> -> vector<18x18x4xbf16>
    %7 = vector.extract_strided_slice %6 {offsets = [0, 0, 0], sizes = [16, 18, 4], strides = [1, 1, 1]} : vector<18x18x4xbf16> to vector<16x18x4xbf16>
    %8 = vector.extract_strided_slice %7 {offsets = [0, 0, 0], sizes = [16, 16, 4], strides = [1, 1, 1]} : vector<16x18x4xbf16> to vector<16x16x4xbf16>
    %9 = vector.shape_cast %8 : vector<16x16x4xbf16> to vector<256x4xbf16>
    %10 = vector.extract_strided_slice %7 {offsets = [0, 1, 0], sizes = [16, 16, 4], strides = [1, 1, 1]} : vector<16x18x4xbf16> to vector<16x16x4xbf16>
    %11 = vector.shape_cast %10 : vector<16x16x4xbf16> to vector<256x4xbf16>
    %12 = vector.extract_strided_slice %7 {offsets = [0, 2, 0], sizes = [16, 16, 4], strides = [1, 1, 1]} : vector<16x18x4xbf16> to vector<16x16x4xbf16>
    %13 = vector.shape_cast %12 : vector<16x16x4xbf16> to vector<256x4xbf16>
    %14 = vector.extract_strided_slice %6 {offsets = [1, 0, 0], sizes = [16, 18, 4], strides = [1, 1, 1]} : vector<18x18x4xbf16> to vector<16x18x4xbf16>
    %15 = vector.extract_strided_slice %14 {offsets = [0, 0, 0], sizes = [16, 16, 4], strides = [1, 1, 1]} : vector<16x18x4xbf16> to vector<16x16x4xbf16>
    %16 = vector.shape_cast %15 : vector<16x16x4xbf16> to vector<256x4xbf16>
    %17 = vector.extract_strided_slice %14 {offsets = [0, 1, 0], sizes = [16, 16, 4], strides = [1, 1, 1]} : vector<16x18x4xbf16> to vector<16x16x4xbf16>
    %18 = vector.shape_cast %17 : vector<16x16x4xbf16> to vector<256x4xbf16>
    %19 = vector.extract_strided_slice %14 {offsets = [0, 2, 0], sizes = [16, 16, 4], strides = [1, 1, 1]} : vector<16x18x4xbf16> to vector<16x16x4xbf16>
    %20 = vector.shape_cast %19 : vector<16x16x4xbf16> to vector<256x4xbf16>
    %21 = vector.extract_strided_slice %6 {offsets = [2, 0, 0], sizes = [16, 18, 4], strides = [1, 1, 1]} : vector<18x18x4xbf16> to vector<16x18x4xbf16>
    %22 = vector.extract_strided_slice %21 {offsets = [0, 0, 0], sizes = [16, 16, 4], strides = [1, 1, 1]} : vector<16x18x4xbf16> to vector<16x16x4xbf16>
    %23 = vector.shape_cast %22 : vector<16x16x4xbf16> to vector<256x4xbf16>
    %24 = vector.extract_strided_slice %21 {offsets = [0, 1, 0], sizes = [16, 16, 4], strides = [1, 1, 1]} : vector<16x18x4xbf16> to vector<16x16x4xbf16>
    %25 = vector.shape_cast %24 : vector<16x16x4xbf16> to vector<256x4xbf16>
    %26 = vector.extract_strided_slice %21 {offsets = [0, 2, 0], sizes = [16, 16, 4], strides = [1, 1, 1]} : vector<16x18x4xbf16> to vector<16x16x4xbf16>
    %27 = vector.shape_cast %26 : vector<16x16x4xbf16> to vector<256x4xbf16>
    %28 = tpu.concatenate %9, %11, %13, %16, %18, %20, %23, %25, %27 in 1 : vector<256x4xbf16>, vector<256x4xbf16>, vector<256x4xbf16>, vector<256x4xbf16>, vector<256x4xbf16>, vector<256x4xbf16>, vector<256x4xbf16>, vector<256x4xbf16>, vector<256x4xbf16> -> vector<256x36xbf16>
    %c0_4 = arith.constant 0 : index
    %c0_5 = arith.constant 0 : index
    %29 = vector.load %arg2[%c0_4, %c0_5] : memref<36x4xbf16, #tpu.memory_space<vmem>>, vector<36x4xbf16>
    %cst_6 = arith.constant dense<0.000000e+00> : vector<256x4xf32>
    %30 = tpu.matmul %28, %29, %cst_6 {dimension_numbers = #tpu.dot_dimension_numbers<[1], [0], [0], [1], [0, 0, 1, 1], [], []>} : vector<256x36xbf16>, vector<36x4xbf16>, vector<256x4xf32> -> vector<256x4xf32>
    %31 = vector.shape_cast %30 : vector<256x4xf32> to vector<16x16x4xf32>
    %32 = arith.truncf %31 : vector<16x16x4xf32> to vector<16x16x4xbf16>
    %c0_7 = arith.constant 0 : index
    %c0_8 = arith.constant 0 : index
    %c0_9 = arith.constant 0 : index
    %c0_10 = arith.constant 0 : index
    %33 = vector.load %arg3[%c0_7, %c0_8, %c0_9, %c0_10] : memref<1x16x16x4xbf16, #tpu.memory_space<vmem>>, vector<1x16x16x4xbf16>
    %34 = vector.shape_cast %33 : vector<1x16x16x4xbf16> to vector<16x16x4xbf16>
    %35 = vector.shape_cast %32 : vector<16x16x4xbf16> to vector<1x16x16x4xbf16>
    tpu.vector_store %arg3[%c0_7, %c0_8, %c0_9, %c0_10], %35 {strides = array<i32>} : memref<1x16x16x4xbf16, #tpu.memory_space<vmem>>, vector<1x16x16x4xbf16>,
    %cst_11 = arith.constant dense<0.000000e+00> : vector<4xf32>
    %36 = vector.multi_reduction <add>, %30, %cst_11 [0] : vector<256x4xf32> to vector<4xf32>
    %37 = vector.shape_cast %36 : vector<4xf32> to vector<1x4xf32>
    %c0_12 = arith.constant 0 : index
    %c0_13 = arith.constant 0 : index
    %c0_14 = arith.constant 0 : index
    %38 = vector.load %arg4[%c0_12, %c0_13, %c0_14] : memref<1x1x4xf32, #tpu.memory_space<vmem>>, vector<1x1x4xf32>
    %39 = vector.shape_cast %38 : vector<1x1x4xf32> to vector<1x4xf32>
    %40 = vector.shape_cast %37 : vector<1x4xf32> to vector<1x1x4xf32>
    tpu.vector_store %arg4[%c0_12, %c0_13, %c0_14], %40 {strides = array<i32>} : memref<1x1x4xf32, #tpu.memory_space<vmem>>, vector<1x1x4xf32>,
    %41 = arith.mulf %30, %30 : vector<256x4xf32>
    %cst_15 = arith.constant dense<0.000000e+00> : vector<4xf32>
    %42 = vector.multi_reduction <add>, %41, %cst_15 [0] : vector<256x4xf32> to vector<4xf32>
    %43 = vector.shape_cast %42 : vector<4xf32> to vector<1x4xf32>
    %c0_16 = arith.constant 0 : index
    %c0_17 = arith.constant 0 : index
    %c0_18 = arith.constant 0 : index
    %44 = vector.load %arg5[%c0_16, %c0_17, %c0_18] : memref<1x1x4xf32, #tpu.memory_space<vmem>>, vector<1x1x4xf32>
    %45 = vector.shape_cast %44 : vector<1x1x4xf32> to vector<1x4xf32>
    %46 = vector.shape_cast %43 : vector<1x4xf32> to vector<1x1x4xf32>
    tpu.vector_store %arg5[%c0_16, %c0_17, %c0_18], %46 {strides = array<i32>} : memref<1x1x4xf32, #tpu.memory_space<vmem>>, vector<1x1x4xf32>,
    return
  }
  func.func @transform_0(%arg0: i32) -> (i32, i32, i32, i32) {
    %c0_i32 = arith.constant 0 : i32
    %c0_i32_0 = arith.constant 0 : i32
    %c0_i32_1 = arith.constant 0 : i32
    %c0_i32_2 = arith.constant 0 : i32
    return %arg0, %c0_i32, %c0_i32_0, %c0_i32_1 : i32, i32, i32, i32
  }
  func.func @transform_1(%arg0: i32) -> (i32, i32) {
    %c0_i32 = arith.constant 0 : i32
    %c0_i32_0 = arith.constant 0 : i32
    %c0_i32_1 = arith.constant 0 : i32
    return %c0_i32, %c0_i32_0 : i32, i32
  }
  func.func @transform_2(%arg0: i32) -> (i32, i32, i32, i32) {
    %c0_i32 = arith.constant 0 : i32
    %c0_i32_0 = arith.constant 0 : i32
    %c0_i32_1 = arith.constant 0 : i32
    %c0_i32_2 = arith.constant 0 : i32
    return %arg0, %c0_i32, %c0_i32_0, %c0_i32_1 : i32, i32, i32, i32
  }
  func.func @transform_3(%arg0: i32) -> (i32, i32, i32) {
    %c0_i32 = arith.constant 0 : i32
    %c0_i32_0 = arith.constant 0 : i32
    %c0_i32_1 = arith.constant 0 : i32
    return %arg0, %c0_i32, %c0_i32_0 : i32, i32, i32
  }
  func.func @transform_4(%arg0: i32) -> (i32, i32, i32) {
    %c0_i32 = arith.constant 0 : i32
    %c0_i32_0 = arith.constant 0 : i32
    %c0_i32_1 = arith.constant 0 : i32
    return %arg0, %c0_i32, %c0_i32_0 : i32, i32, i32
  }
}

</mosaic_0001>

<bundles_post_ra>
// kernel: tpu_custom_call.1
= control target key start
LH: loop header
LB: loop body
LE: loop exit
PB: predicated region body
PF: predicated region fallthrough
CT: control target
= control target key end

     0   :  { %10 = vsyncpa [#allocation3], 0  ;;  %s3136_s0 = inlined_call_operand.vmem [shape: f32[2,16,16,4], index: 0, kind: input, shape index: {}]   ;;  %s3137_s1 = inlined_call_operand.vmem [shape: bf16[36,4], index: 1, kind: input, shape index: {}]   ;;  %s3138_s2 = inlined_call_operand.vmem [shape: bf16[2,16,16,4], index: 2, kind: output, shape index: {0}]   ;;  %s3139_s3 = inlined_call_operand.hbm [shape: f32[2,1,4], index: 3, kind: output, shape index: {1}]   ;;  %s3140_s4 = inlined_call_operand.hbm [shape: f32[2,1,4], index: 4, kind: output, shape index: {2}]  }
   0x1   :  { %12 = vsyncpa [#allocation3 + $0x1], 0 }
   0x2   :  { %13 = vsyncpa [#allocation5], 0 }
   0x3   :  { %15 = vsyncpa [#allocation5 + $0x1], 0  ;;  %s2294_s15 = smov 0   ;;  %s2296_s16 = smov 0  }
   0x4   :  { %s2298_s17 = smov 0   ;;  %s2300_s18 = smov 0  }
   0x5 LB: > { %s2315_s19 = sadd.s32 4294967295, %s2256_s18   ;;  %s1948_s20 = sadd.s32 4294967294, %s2256_s18   ;;  %s2256_s18 = sphi %s2300_s18, %s3148_s18   ;;  %s2252_s17 = sphi %s2298_s17, %s3147_s17   ;;  %s2248_s16 = sphi %s2296_s16, %s3146_s16   ;;  %s2244_s15 = sphi %s2294_s15, %s3145_s15  }
   0x6   : > { %s2319_s21 = sadd.s32 1, %s2256_s18   ;;  %s101_s22 = sadd.s32 1, %s2252_s17 }
   0x7   : > { %s98_s23 = ssub.s32 %s2256_s18, %s2319_s21  ;;  %p111_p0 = scmp.ne.s32.totalorder %s2252_s17, %s2248_s16 }
   0x8   : > { %p99_p1 = scmp.eq.s32.totalorder %s98_s23, 0  ;;  %p112_p2 = scmp.eq.s32.totalorder %s2315_s19, 1 }
   0x9   : > { %p117_p3 = scmp.ne.s32.totalorder %s2248_s16, %s2244_s15  ;;  %p118_p4 = scmp.eq.s32.totalorder %s1948_s20, 1 }
   0xa   : > { %s2330_s24 = scalar_select %p99_p1, %s2252_s17, %s101_s22  }
   0xb   : > { %p2332_p5 = por %p112_p2, %p111_p0  ;;  %p2336_p6 = por %p118_p4, %p117_p3 }
   0xc   : > { %p1951_p7 = scmp.ge.s32.totalorder %s2256_s18, 1  ;;  %p173_p8 = scmp.lt.s32.totalorder %s2256_s18, 3 }
   0xe   : > { %p174_p9 = pnand %p1951_p7, %p173_p8 }
   0xf   : > { %p207_p10 = scmp.lt.s32.totalorder (!%p174_p9), %s2315_s19, 1  ;;  %s2259_s27 = smov (!%p174_p9), 8  }
  0x10   : > { %177 = sbr.rel (%p174_p9) target bundleno = 654 (0x28e), region = 28  ;;  %s2260_s28 = smov (!%p174_p9), 4  }
  0x11   : > { %s2261_s8 = smov (!%p174_p9), 12   ;;  %s2262_s9 = smov (!%p174_p9), 24  }
  0x12   : > { %s2263_s10 = smov (!%p174_p9), 20   ;;  %s2264_s11 = smov (!%p174_p9), 16  }
  0x13   : > { %s2265_s12 = smov (!%p174_p9), 28   ;;  %s2266_s23 = smov (!%p174_p9), 32  }
  0x15   : > { %v2258_v0 = vmov 0   ;;  %s2351_s29 = scalar_select %p207_p10, %s2315_s19, 1  ;;  %vm410_vm0 = vcmask 1040384   ;;  %vm411_vm1 = vsmask.f32 256  ;;  %vm665_vm3 = vcmask 1046528  }
  0x16   : > { %v2343_v1 = vrot.slane %v2258_v0, 1  ;;  %vm2365_vm2 = vmand %vm410_vm0, %vm411_vm1  ;;  %vm445_vm4 = vsmask.f32 7424  ;;  %vm1303_vm5 = vcmask 1041408   ;;  %vm986_vm6 = vcmask 31744  }
  0x17   : > { %s2011_s30 = sshll.u32 %s2351_s29, 8  ;;  %vm1019_vm7 = vcmask 64512   ;;  %vm1052_vm8 = vcmask 97280   ;;  %vm1085_vm9 = vcmask 130048   ;;  %vm1118_vm10 = vcmask 162816  }
  0x18   : > { %762 = vrot.lane.b32.xlu1 %v2343_v1, %s2259_s27  ;;  %730 = vrot.lane.b32.xlu0 %v2343_v1, %s2260_s28  ;;  %s2357_s7 = scalar_lea.vmem %s3136_s0, %s2011_s30  ;;  %vm1151_vm11 = vcmask 195584   ;;  %vm1184_vm12 = vcmask 228352   ;;  %vm1217_vm13 = vcmask 261120   ;;  %vm1270_vm14 = vcmask 293888  }
  0x19   : > { %v220_v2 = vld [vmem:[%s2357_s7 + $0x10] sm:$0xff]  ;;  %v221_v3 = vld [vmem:[%s2357_s7 + $0x18] sm:$0xff]  ;;  %v218_v4 = vld [vmem:[%s2357_s7] sm:$0xff]  ;;  %vm1596_vm15 = vcmask 27648   ;;  %vm1698_vm0 = vcmask 24576  }
  0x1a   : > { %v251_v5 = vpack.c.bf16 %v221_v3, %v220_v2  ;;  %v219_v6 = vld [vmem:[%s2357_s7 + $0x8] sm:$0xff]  ;;  %v222_v7 = vld [vmem:[%s2357_s7 + $0x20] sm:$0xff]  ;;  %v224_v36 = vld [vmem:[%s2357_s7 + $0x30] sm:$0xff] }
  0x1b   : > { %v223_v8 = vld [vmem:[%s2357_s7 + $0x28] sm:$0xff]  ;;  %v250_v9 = vpack.c.bf16 %v219_v6, %v218_v4  ;;  %v225_v37 = vld [vmem:[%s2357_s7 + $0x38] sm:$0xff]  ;;  %v226_v62 = vld [vmem:[%s2357_s7 + $0x40] sm:$0xff] }
  0x1c   : > { %v252_v10 = vpack.c.bf16 %v223_v8, %v222_v7  ;;  %v274_v11 = vshrl.u32 %v251_v5, 16  ;;  %v277_v12 = vshll.u32 %v251_v5, 16  ;;  %v253_v48 = vpack.c.bf16 %v225_v37, %v224_v36  ;;  %v227_v63 = vld [vmem:[%s2357_s7 + $0x48] sm:$0xff]  ;;  %v2163_v5 = vld [vmem:[%s3137_s1 + $0x10] ss:$0 sps:$4 sm:$0x33]  }
  0x1d   : > { %v267_v13 = vshrl.u32 %v250_v9, 16  ;;  %v270_v14 = vshll.u32 %v250_v9, 16  ;;  %v254_v4 = vpack.c.bf16 %v227_v63, %v226_v62  ;;  %2108 = vmatprep.subr.msk.bf16.mxu0 %vm1303_vm5, %v2163_v5  ;;  %2109 = vmatprep.subr.msk.bf16.mxu1 %vm1303_vm5, %v2163_v5 }
  0x1e   : > { %v281_v15 = vshrl.u32 %v252_v10, 16  ;;  %v284_v16 = vshll.u32 %v252_v10, 16  ;;  %v276_v17 = vrot.slane %v274_v11, 7  ;;  %v288_v56 = vshrl.u32 %v253_v48, 16  ;;  %v2164_v10 = vld [vmem:[%s3137_s1 + $0x8] sm:$0xff]  }
  0x1f   : > { %v269_v19 = vrot.slane %v267_v13, 7  ;;  %v291_v61 = vshll.u32 %v253_v48, 16  ;;  %v295_v9 = vshrl.u32 %v254_v4, 16 }
  0x20   : > { %v283_v20 = vrot.slane %v281_v15, 7  ;;  %v279_v21 = vor.u32 %v277_v12, %v276_v17  ;;  %v430_v27 = vsel %vm2365_vm2, %v276_v17, 0  ;;  %v290_v60 = vrot.slane %v288_v56, 7  ;;  %v2165_v17 = vld [vmem:[%s3137_s1] sm:$0xff]  }
  0x21   : > { %v272_v22 = vor.u32 %v270_v14, %v269_v19  ;;  %v429_v24 = vsel %vm2365_vm2, %v269_v19, 0  ;;  %v672_v39 = vrot.slane %v430_v27, 1  ;;  %v474_v40 = vshll.u32 %v430_v27, 16 }
  0x22   : > { %v286_v23 = vor.u32 %v284_v16, %v283_v20  ;;  %v2373_v25 = vsel %vm2365_vm2, 0, %v279_v21  ;;  %v669_v30 = vrot.slane %v429_v24, 1  ;;  %v462_v33 = vshll.u32 %v429_v24, 16 }
  0x23   : > { %796 = vrot.lane.b32.xlu1 %v2373_v25, %s2261_s8  ;;  %v2379_v26 = vsel %vm2365_vm2, 0, %v272_v22  ;;  %v469_v34 = vshll.u32 %v2373_v25, 16  ;;  %v671_v38 = vrot.slane %v2373_v25, 1  ;;  %v467_v42 = vshrl.u32 %v2373_v25, 16 }
  0x24   : > { %794 = vrot.lane.b32.xlu0 %v2379_v26, %s2261_s8  ;;  %v2387_v28 = vsel %vm2365_vm2, 0, %v286_v23  ;;  %v668_v29 = vrot.slane %v2379_v26, 1  ;;  %v457_v31 = vshll.u32 %v2379_v26, 16  ;;  %v455_v32 = vshrl.u32 %v2379_v26, 16 }
  0x25   : > { %v471_v43 = vrot.slane %v469_v34, 1  ;;  %v481_v44 = vshll.u32 %v2387_v28, 16  ;;  %v464_v46 = vrot.slane %v462_v33, 1  ;;  %v431_v47 = vsel %vm2365_vm2, %v283_v20, 0 }
  0x26   : > { %v459_v35 = vrot.slane %v457_v31, 1  ;;  %v670_v41 = vsel %vm665_vm3, %v668_v29, %v669_v30  ;;  %v673_v49 = vsel %vm665_vm3, %v671_v38, %v672_v39  ;;  %v476_v50 = vrot.slane %v474_v40, 1  ;;  %v228_v29 = vld [vmem:[%s2357_s7 + $0x50] sm:$0xff]  ;;  %v229_v30 = vld [vmem:[%s2357_s7 + $0x58] sm:$0xff] }
  0x27   : > { %892 = vrot.lane.b32.xlu1 %v2387_v28, %s2262_s9  ;;  %v472_v51 = vor.u32 %v471_v43, %v467_v42  ;;  %v479_v52 = vshrl.u32 %v2387_v28, 16  ;;  %v483_v53 = vrot.slane %v481_v44, 1  ;;  %v486_v54 = vshll.u32 %v431_v47, 16 }
  0x28   : > { %890 = vrot.lane.b32.xlu0 %v2373_v25, %s2262_s9  ;;  %v460_v45 = vor.u32 %v459_v35, %v455_v32  ;;  %v293_v3 = vor.u32 %v291_v61, %v290_v60  ;;  %v674_v6 = vrot.slane %v2387_v28, 1  ;;  %v675_v7 = vrot.slane %v431_v47, 1  ;;  %v231_v47 = vld [vmem:[%s2357_s7 + $0x68] sm:$0xff] }
  0x29   : > { %v477_v57 = vsel %vm445_vm4, %v472_v51, %v476_v50  ;;  %v484_v58 = vor.u32 %v483_v53, %v479_v52  ;;  %v488_v59 = vrot.slane %v486_v54, 1  ;;  %v1305_v12 = vsel %vm1303_vm5, %v2163_v5, 0  ;;  %v232_v5 = vld [vmem:[%s2357_s7 + $0x70] sm:$0xff] }
  0x2a   : > { %v465_v55 = vsel %vm445_vm4, %v460_v45, %v464_v46  ;;  %v2426_v8 = vsel %vm2365_vm2, 0, %v293_v3  ;;  %v676_v13 = vsel %vm665_vm3, %v674_v6, %v675_v7  ;;  %v432_v14 = vsel %vm2365_vm2, %v290_v60, 0  ;;  %2065 = vmatpush3.bf16.msra.mxu0 %v1305_v12  ;;  %2105 = vmatpush3.bf16.msra.mxu1 %v1305_v12  ;;  %v230_v46 = vld [vmem:[%s2357_s7 + $0x60] sm:$0xff]  ;;  %v233_v6 = vld [vmem:[%s2357_s7 + $0x78] sm:$0xff] }
  0x2b   : > { %764 = vrot.lane.b32.xlu1 %v670_v41, %s2259_s27  ;;  %v489_v2 = vsel %vm445_vm4, %v484_v58, %v488_v59  ;;  %v493_v11 = vshll.u32 %v2426_v8, 16  ;;  %v297_v15 = vrot.slane %v295_v9, 7  ;;  %v298_v16 = vshll.u32 %v254_v4, 16  ;;  %2066 = vmatprep.subr.bf16.mxu0 %v2164_v10 }
  0x2c   : > { %858 = vrot.lane.b32.xlu0 %v670_v41, %s2263_s10  ;;  %2103 = vmatprep.subr.bf16.mxu1 %v2164_v10  ;;  %v491_v19 = vshrl.u32 %v2426_v8, 16  ;;  %v498_v21 = vshll.u32 %v432_v14, 16  ;;  %v677_v32 = vrot.slane %v2426_v8, 1  ;;  %v678_v33 = vrot.slane %v432_v14, 1 }
  0x2d   : > { %v495_v20 = vrot.slane %v493_v11, 1  ;;  %v300_v22 = vor.u32 %v298_v16, %v297_v15  ;;  %v433_v35 = vsel %vm2365_vm2, %v297_v15, 0  ;;  %v255_v36 = vpack.c.bf16 %v229_v30, %v228_v29  ;;  %v235_v29 = vld [vmem:[%s2357_s7 + $0x88] sm:$0xff] }
  0x2e   : > { %2067 = vmatpush3.bf16.msra.mxu0 %v2164_v10  ;;  %2106 = vmatpush3.bf16.msra.mxu1 %v2164_v10  ;;  %v500_v24 = vrot.slane %v498_v21, 1  ;;  %v679_v37 = vsel %vm665_vm3, %v677_v32, %v678_v33  ;;  %v510_v40 = vshll.u32 %v433_v35, 16  ;;  %v256_v50 = vpack.c.bf16 %v231_v47, %v230_v46 }
  0x2f   : > { %860 = vrot.lane.b32.xlu1 %v673_v49, %s2263_s10  ;;  %2068 = vmatprep.subr.bf16.mxu0 %v2165_v17  ;;  %v496_v23 = vor.u32 %v495_v20, %v491_v19  ;;  %v2447_v27 = vsel %vm2365_vm2, 0, %v300_v22  ;;  %v302_v41 = vshrl.u32 %v255_v36, 16  ;;  %v305_v45 = vshll.u32 %v255_v36, 16 }
  0x30   : > { %732 = vrot.lane.b32.xlu0 %v465_v55, %s2260_s28  ;;  %2104 = vmatprep.subr.bf16.mxu1 %v2165_v17  ;;  %v505_v34 = vshll.u32 %v2447_v27, 16  ;;  %v503_v38 = vshrl.u32 %v2447_v27, 16  ;;  %v512_v43 = vrot.slane %v510_v40, 1  ;;  %v680_v51 = vrot.slane %v2447_v27, 1 }
  0x31   : > { %v501_v31 = vsel %vm445_vm4, %v496_v23, %v500_v24  ;;  %v304_v44 = vrot.slane %v302_v41, 7  ;;  %v681_v52 = vrot.slane %v433_v35, 1  ;;  %v309_v54 = vshrl.u32 %v256_v50, 16  ;;  %v234_v24 = vld [vmem:[%s2357_s7 + $0x80] sm:$0xff] }
  0x32   : > { %2069 = vmatpush3.bf16.msra.mxu0 %v2165_v17  ;;  %2107 = vmatpush3.bf16.msra.mxu1 %v2165_v17  ;;  %v507_v39 = vrot.slane %v505_v34, 1  ;;  %v312_v59 = vshll.u32 %v256_v50, 16  ;;  %v258_v32 = vpack.c.bf16 %v235_v29, %v234_v24  ;;  %v237_v50 = vld [vmem:[%s2357_s7 + $0x98] sm:$0xff] }
  0x33   : > { %828 = vrot.lane.b32.xlu1 %v477_v57, %s2264_s11  ;;  %v682_v56 = vsel %vm665_vm3, %v680_v51, %v681_v52  ;;  %v311_v58 = vrot.slane %v309_v54, 7 }
  0x34   : > { %826 = vrot.lane.b32.xlu0 %v465_v55, %s2264_s11  ;;  %v508_v42 = vor.u32 %v507_v39, %v503_v38  ;;  %v323_v36 = vshrl.u32 %v258_v32, 16  ;;  %v326_v41 = vshll.u32 %v258_v32, 16 }
  0x35   : > { %v314_v63 = vor.u32 %v312_v59, %v311_v58  ;;  %v435_v12 = vsel %vm2365_vm2, %v311_v58, 0 }
  0x36   : > { %v513_v48 = vsel %vm445_vm4, %v508_v42, %v512_v43  ;;  %v534_v17 = vshll.u32 %v435_v12, 16  ;;  %v687_v34 = vrot.slane %v435_v12, 1  ;;  %v325_v40 = vrot.slane %v323_v36, 7 }
  0x37   : > { %924 = vrot.lane.b32.xlu1 %v489_v2, %s2265_s12  ;;  %v2493_v4 = vsel %vm2365_vm2, 0, %v314_v63 }
  0x38   : > { %922 = vrot.lane.b32.xlu0 %v477_v57, %s2265_s12  ;;  %v529_v11 = vshll.u32 %v2493_v4, 16  ;;  %v527_v15 = vshrl.u32 %v2493_v4, 16  ;;  %v536_v21 = vrot.slane %v534_v17, 1  ;;  %v686_v33 = vrot.slane %v2493_v4, 1 }
  0x3a   : > { %v531_v16 = vrot.slane %v529_v11, 1  ;;  %v688_v38 = vsel %vm665_vm3, %v686_v33, %v687_v34 }
  0x3b   : > { %734 = vrot.lane.b32.xlu1 %v477_v57, %s2260_s28  ;;  %v434_v57 = vsel %vm2365_vm2, %v304_v44, 0 }
  0x3c   : > { %954 = vrot.lane.b32.xlu0 %v673_v49, %s2266_s23  ;;  %v522_v62 = vshll.u32 %v434_v57, 16  ;;  %v684_v10 = vrot.slane %v434_v57, 1  ;;  %v532_v20 = vor.u32 %v531_v16, %v527_v15 }
  0x3e   : > { %v524_v3 = vrot.slane %v522_v62, 1  ;;  %v537_v30 = vsel %vm445_vm4, %v532_v20, %v536_v21 }
  0x3f   : > { %736 = vrot.lane.b32.xlu1 %v489_v2, %s2260_s28 }
  0x40   : > { %956 = vrot.lane.b32.xlu0 %v676_v13, %s2266_s23 }
  0x43   : > { %768 = vrot.lane.b32.xlu1 %v676_v13, %s2259_s27 }
  0x44   : > { %766 = vrot.lane.b32.xlu0 %v673_v49, %s2259_s27  ;;  %v307_v49 = vor.u32 %v305_v45, %v304_v44  ;;  %v328_v45 = vor.u32 %v326_v41, %v325_v40 }
  0x46   : > { %v2478_v53 = vsel %vm2365_vm2, 0, %v307_v49  ;;  %v236_v49 = vld [vmem:[%s2357_s7 + $0x90] sm:$0xff] }
  0x47   : > { %800 = vrot.lane.b32.xlu1 %v2426_v8, %s2261_s8  ;;  %v517_v55 = vshll.u32 %v2478_v53, 16  ;;  %v515_v60 = vshrl.u32 %v2478_v53, 16  ;;  %v683_v9 = vrot.slane %v2478_v53, 1  ;;  %v259_v57 = vpack.c.bf16 %v237_v50, %v236_v49 }
  0x48   : > { %798 = vrot.lane.b32.xlu0 %v2387_v28, %s2261_s8 }
  0x49   : > { %v519_v61 = vrot.slane %v517_v55, 1  ;;  %v685_v14 = vsel %vm665_vm3, %v683_v9, %v684_v10  ;;  %v330_v62 = vshrl.u32 %v259_v57, 16  ;;  %v238_v9 = vld [vmem:[%s2357_s7 + $0xa0] sm:$0xff]  ;;  %v239_v10 = vld [vmem:[%s2357_s7 + $0xa8] sm:$0xff] }
  0x4b   : > { %832 = vrot.lane.b32.xlu1 %v501_v31, %s2264_s11 }
  0x4c   : > { %830 = vrot.lane.b32.xlu0 %v489_v2, %s2264_s11  ;;  %v520_v2 = vor.u32 %v519_v61, %v515_v60 }
  0x4e   : > { %v525_v7 = vsel %vm445_vm4, %v520_v2, %v524_v3 }
  0x4f   : > { %864 = vrot.lane.b32.xlu1 %v679_v37, %s2263_s10 }
  0x50   : > { %862 = vrot.lane.b32.xlu0 %v676_v13, %s2263_s10  ;;  %v257_v13 = vpack.c.bf16 %v233_v6, %v232_v5  ;;  %v332_v6 = vrot.slane %v330_v62, 7 }
  0x52   : > { %v316_v19 = vshrl.u32 %v257_v13, 16  ;;  %v319_v23 = vshll.u32 %v257_v13, 16 }
  0x53   : > { %896 = vrot.lane.b32.xlu1 %v2447_v27, %s2262_s9 }
  0x54   : > { %894 = vrot.lane.b32.xlu0 %v2426_v8, %s2262_s9  ;;  %v318_v22 = vrot.slane %v316_v19, 7 }
  0x56   : > { %v436_v39 = vsel %vm2365_vm2, %v318_v22, 0 }
  0x57   : > { %928 = vrot.lane.b32.xlu1 %v513_v48, %s2265_s12  ;;  %v546_v44 = vshll.u32 %v436_v39, 16  ;;  %v690_v54 = vrot.slane %v436_v39, 1 }
  0x58   : > { %926 = vrot.lane.b32.xlu0 %v501_v31, %s2265_s12 }
  0x59   : > { %v548_v47 = vrot.slane %v546_v44, 1 }
  0x5b   : > { %738 = vrot.lane.b32.xlu1 %v501_v31, %s2260_s28  ;;  %v321_v31 = vor.u32 %v319_v23, %v318_v22 }
  0x5c   : > { %958 = vrot.lane.b32.xlu0 %v679_v37, %s2266_s23 }
  0x5d   : > { %v2524_v35 = vsel %vm2365_vm2, 0, %v321_v31 }
  0x5e   : > { %v539_v42 = vshrl.u32 %v2524_v35, 16  ;;  %v689_v52 = vrot.slane %v2524_v35, 1 }
  0x5f   : > { %740 = vrot.lane.b32.xlu1 %v513_v48, %s2260_s28 }
  0x60   : > { %960 = vrot.lane.b32.xlu0 %v682_v56, %s2266_s23  ;;  %v691_v58 = vsel %vm665_vm3, %v689_v52, %v690_v54  ;;  %v240_v52 = vld [vmem:[%s2357_s7 + $0xb0] sm:$0xff]  ;;  %v241_v54 = vld [vmem:[%s2357_s7 + $0xb8] sm:$0xff] }
  0x63   : > { %772 = vrot.lane.b32.xlu1 %v682_v56, %s2259_s27 }
  0x64   : > { %770 = vrot.lane.b32.xlu0 %v679_v37, %s2259_s27  ;;  %v541_v37 = vshll.u32 %v2524_v35, 16 }
  0x66   : > { %v543_v43 = vrot.slane %v541_v37, 1 }
  0x67   : > { %804 = vrot.lane.b32.xlu1 %v2478_v53, %s2261_s8 }
  0x68   : > { %802 = vrot.lane.b32.xlu0 %v2447_v27, %s2261_s8  ;;  %v544_v46 = vor.u32 %v543_v43, %v539_v42 }
  0x6a   : > { %v549_v51 = vsel %vm445_vm4, %v544_v46, %v548_v47 }
  0x6b   : > { %836 = vrot.lane.b32.xlu1 %v525_v7, %s2264_s11 }
  0x6c   : > { %834 = vrot.lane.b32.xlu0 %v513_v48, %s2264_s11  ;;  %v2539_v48 = vsel %vm2365_vm2, 0, %v328_v45 }
  0x6d   : > { %v553_v55 = vshll.u32 %v2539_v48, 16  ;;  %v551_v59 = vshrl.u32 %v2539_v48, 16  ;;  %v692_v17 = vrot.slane %v2539_v48, 1 }
  0x6f   : > { %868 = vrot.lane.b32.xlu1 %v685_v14, %s2263_s10  ;;  %v555_v60 = vrot.slane %v553_v55, 1 }
  0x70   : > { %866 = vrot.lane.b32.xlu0 %v682_v56, %s2263_s10  ;;  %v437_v56 = vsel %vm2365_vm2, %v325_v40, 0 }
  0x71   : > { %v558_v61 = vshll.u32 %v437_v56, 16  ;;  %v556_v3 = vor.u32 %v555_v60, %v551_v59  ;;  %v693_v19 = vrot.slane %v437_v56, 1 }
  0x73   : > { %900 = vrot.lane.b32.xlu1 %v2493_v4, %s2262_s9  ;;  %v560_v5 = vrot.slane %v558_v61, 1  ;;  %v2581_v29 = vsel %vm665_vm3, %v692_v17, %v693_v19 }
  0x74   : > { %898 = vrot.lane.b32.xlu0 %v2478_v53, %s2262_s9 }
  0x75   : > { %v2565_v11 = vsel %vm445_vm4, %v556_v3, %v560_v5 }
  0x77   : > { %932 = vrot.lane.b32.xlu1 %v537_v30, %s2265_s12 }
  0x78   : > { %930 = vrot.lane.b32.xlu0 %v525_v7, %s2265_s12 }
  0x7b   : > { %742 = vrot.lane.b32.xlu1 %v525_v7, %s2260_s28  ;;  %v333_v7 = vshll.u32 %v259_v57, 16 }
  0x7c   : > { %962 = vrot.lane.b32.xlu0 %v685_v14, %s2266_s23 }
  0x7d   : > { %v335_v13 = vor.u32 %v333_v7, %v332_v6 }
  0x7f   : > { %744 = vrot.lane.b32.xlu1 %v537_v30, %s2260_s28  ;;  %v2575_v20 = vsel %vm2365_vm2, 0, %v335_v13 }
  0x80   : > { %964 = vrot.lane.b32.xlu0 %v688_v38, %s2266_s23  ;;  %v565_v23 = vshll.u32 %v2575_v20, 16  ;;  %v563_v34 = vshrl.u32 %v2575_v20, 16  ;;  %v695_v56 = vrot.slane %v2575_v20, 1 }
  0x82   : > { %v567_v36 = vrot.slane %v565_v23, 1 }
  0x83   : > { %776 = vrot.lane.b32.xlu1 %v688_v38, %s2259_s27 }
  0x84   : > { %774 = vrot.lane.b32.xlu0 %v685_v14, %s2259_s27  ;;  %v260_v14 = vpack.c.bf16 %v239_v10, %v238_v9  ;;  %v568_v44 = vor.u32 %v567_v36, %v563_v34 }
  0x86   : > { %v337_v21 = vshrl.u32 %v260_v14, 16  ;;  %v340_v32 = vshll.u32 %v260_v14, 16 }
  0x87   : > { %808 = vrot.lane.b32.xlu1 %v2524_v35, %s2261_s8 }
  0x88   : > { %806 = vrot.lane.b32.xlu0 %v2493_v4, %s2261_s8  ;;  %v339_v31 = vrot.slane %v337_v21, 7 }
  0x8a   : > { %v763_v63 = vpop.permute.xlu1 %762  ;;  %v731_v2 = vpop.permute.xlu0 %730  ;;  %v342_v39 = vor.u32 %v340_v32, %v339_v31 }
  0x8b   : > { %840 = vrot.lane.b32.xlu1 %v549_v51, %s2264_s11  ;;  %v988_v40 = vsel %vm986_vm6, 0, %v731_v2  ;;  %v261_v2 = vpack.c.bf16 %v241_v54, %v240_v52 }
  0x8c   : > { %838 = vrot.lane.b32.xlu0 %v537_v30, %s2264_s11  ;;  %v438_v30 = vsel %vm2365_vm2, %v332_v6, 0  ;;  %v1021_v46 = vsel %vm1019_vm7, %v988_v40, %v763_v63  ;;  %v2600_v49 = vsel %vm2365_vm2, 0, %v342_v39  ;;  %v439_v63 = vsel %vm2365_vm2, %v339_v31, 0 }
  0x8d   : > { %v570_v37 = vshll.u32 %v438_v30, 16  ;;  %v696_v57 = vrot.slane %v438_v30, 1  ;;  %v577_v60 = vshll.u32 %v2600_v49, 16  ;;  %v575_v9 = vshrl.u32 %v2600_v49, 16 }
  0x8e   : > { %v344_v14 = vshrl.u32 %v261_v2, 16  ;;  %v347_v30 = vshll.u32 %v261_v2, 16 }
  0x8f   : > { %872 = vrot.lane.b32.xlu1 %v691_v58, %s2263_s10  ;;  %v572_v45 = vrot.slane %v570_v37, 1  ;;  %v697_v6 = vsel %vm665_vm3, %v695_v56, %v696_v57  ;;  %v579_v10 = vrot.slane %v577_v60, 1 }
  0x90   : > { %870 = vrot.lane.b32.xlu0 %v688_v38, %s2263_s10 }
  0x91   : > { %v573_v59 = vsel %vm445_vm4, %v568_v44, %v572_v45  ;;  %v580_v21 = vor.u32 %v579_v10, %v575_v9 }
  0x93   : > { %904 = vrot.lane.b32.xlu1 %v2539_v48, %s2262_s9 }
  0x94   : > { %902 = vrot.lane.b32.xlu0 %v2524_v35, %s2262_s9 }
  0x95   : > { %v797_v12 = vpop.permute.xlu1 %796 }
  0x96   : > { %v795_v15 = vpop.permute.xlu0 %794 }
  0x97   : > { %936 = vrot.lane.b32.xlu1 %v2565_v11, %s2265_s12 }
  0x98   : > { %934 = vrot.lane.b32.xlu0 %v549_v51, %s2265_s12 }
  0x99   : > { %v2570_v16 = vpop.permute.xlu1 %892 }
  0x9a   : > { %v891_v22 = vpop.permute.xlu0 %890 }
  0x9b   : > { %746 = vrot.lane.b32.xlu1 %v549_v51, %s2260_s28 }
  0x9c   : > { %966 = vrot.lane.b32.xlu0 %v691_v58, %s2266_s23 }
  0x9d   : > { %v765_v24 = vpop.permute.xlu1 %764 }
  0x9e   : > { %v859_v33 = vpop.permute.xlu0 %858 }
  0x9f   : > { %748 = vrot.lane.b32.xlu1 %v2565_v11, %s2260_s28 }
  0xa0   : > { %968 = vrot.lane.b32.xlu0 %v2581_v29, %s2266_s23 }
  0xa1   : > { %v861_v38 = vpop.permute.xlu1 %860 }
  0xa2   : > { %v733_v41 = vpop.permute.xlu0 %732 }
  0xa3   : > { %v990_v42 = vsel %vm986_vm6, %v2379_v26, %v733_v41  ;;  %780 = vrot.lane.b32.xlu1 %v2581_v29, %s2259_s27  ;;  %v1054_v26 = vsel %vm1052_vm8, %v1021_v46, %v795_v15  ;;  %v698_v41 = vrot.slane %v2600_v49, 1 }
  0xa4   : > { %v1023_v43 = vsel %vm1019_vm7, %v990_v42, %v765_v24  ;;  %778 = vrot.lane.b32.xlu0 %v691_v58, %s2259_s27  ;;  %v346_v24 = vrot.slane %v344_v14, 7  ;;  %v699_v42 = vrot.slane %v439_v63, 1 }
  0xa5   : > { %v829_v47 = vpop.permute.xlu1 %828  ;;  %v1056_v50 = vsel %vm1052_vm8, %v1023_v43, %v797_v12  ;;  %v582_v12 = vshll.u32 %v439_v63, 16 }
  0xa6   : > { %v827_v51 = vpop.permute.xlu0 %826  ;;  %v1089_v61 = vsel %vm1085_vm9, %v1056_v50, %v829_v47  ;;  %v349_v37 = vor.u32 %v347_v30, %v346_v24  ;;  %v440_v50 = vsel %vm2365_vm2, %v346_v24, 0 }
  0xa7   : > { %v1087_v55 = vsel %vm1085_vm9, %v1054_v26, %v827_v51  ;;  %812 = vrot.lane.b32.xlu1 %v2575_v20, %s2261_s8  ;;  %v1122_v7 = vsel %vm1118_vm10, %v1089_v61, %v861_v38  ;;  %v700_v26 = vsel %vm665_vm3, %v698_v41, %v699_v42  ;;  %v594_v57 = vshll.u32 %v440_v50, 16 }
  0xa8   : > { %v1120_v58 = vsel %vm1118_vm10, %v1087_v55, %v859_v33  ;;  %810 = vrot.lane.b32.xlu0 %v2539_v48, %s2261_s8  ;;  %v1155_v19 = vsel %vm1151_vm11, %v1122_v7, %v2570_v16  ;;  %v242_v33 = vld [vmem:[%s2357_s7 + $0xc0] sm:$0xff]  ;;  %v243_v16 = vld [vmem:[%s2357_s7 + $0xc8] sm:$0xff]  ;;  %v2652_v43 = vsel %vm2365_vm2, 0, %v349_v37  ;;  %v245_v7 = vld [vmem:[%s2357_s7 + $0xd8] sm:$0xff]  ;;  %v702_v10 = vrot.slane %v440_v50, 1 }
  0xa9   : > { %v925_v62 = vpop.permute.xlu1 %924  ;;  %v1153_v5 = vsel %vm1151_vm11, %v1120_v58, %v891_v22  ;;  %v584_v22 = vrot.slane %v582_v12, 1  ;;  %v262_v38 = vpack.c.bf16 %v243_v16, %v242_v33  ;;  %v589_v46 = vshll.u32 %v2652_v43, 16 }
  0xaa   : > { %v923_v3 = vpop.permute.xlu0 %922  ;;  %v1188_v31 = vsel %vm1184_vm12, %v1155_v19, %v925_v62  ;;  %v587_v55 = vshrl.u32 %v2652_v43, 16  ;;  %v596_v62 = vrot.slane %v594_v57, 1  ;;  %v701_v9 = vrot.slane %v2652_v43, 1 }
  0xab   : > { %844 = vrot.lane.b32.xlu1 %v573_v59, %s2264_s11  ;;  %v1186_v15 = vsel %vm1184_vm12, %v1153_v5, %v923_v3  ;;  %v351_v44 = vshrl.u32 %v262_v38, 16  ;;  %v354_v52 = vshll.u32 %v262_v38, 16  ;;  %v591_v56 = vrot.slane %v589_v46, 1  ;;  %v244_v5 = vld [vmem:[%s2357_s7 + $0xd0] sm:$0xff] }
  0xac   : > { %842 = vrot.lane.b32.xlu0 %v2565_v11, %s2264_s11 }
  0xad   : > { %v2625_v13 = vpop.permute.xlu1 %734  ;;  %v353_v51 = vrot.slane %v351_v44, 7  ;;  %v592_v61 = vor.u32 %v591_v56, %v587_v55 }
  0xae   : > { %v955_v17 = vpop.permute.xlu0 %954 }
  0xaf   : > { %876 = vrot.lane.b32.xlu1 %v697_v6, %s2263_s10  ;;  %v1219_v11 = vsel %vm1217_vm13, %v1186_v15, %v955_v17  ;;  %v597_v12 = vsel %vm445_vm4, %v592_v61, %v596_v62  ;;  %v441_v14 = vsel %vm2365_vm2, %v353_v51, 0 }
  0xb0   : > { %874 = vrot.lane.b32.xlu0 %v2581_v29, %s2263_s10  ;;  %2070 = vmatprep.mubr.msk.bf16.mxu0 %vm1270_vm14, %v1219_v11  ;;  %v585_v29 = vsel %vm445_vm4, %v580_v21, %v584_v22  ;;  %v263_v11 = vpack.c.bf16 %v245_v7, %v244_v5  ;;  %v705_v62 = vrot.slane %v441_v14, 1 }
  0xb1   : > { %v2635_v23 = vpop.permute.xlu1 %736 }
  0xb2   : > { %v957_v32 = vpop.permute.xlu0 %956  ;;  %v994_v30 = vsel %vm986_vm6, %v2387_v28, %v2635_v23  ;;  %v358_v38 = vshrl.u32 %v263_v11, 16  ;;  %v361_v50 = vshll.u32 %v263_v11, 16 }
  0xb3   : > { %v1221_v34 = vsel %vm1217_vm13, %v1188_v31, %v957_v32  ;;  %908 = vrot.lane.b32.xlu1 %v2600_v49, %s2262_s9  ;;  %v703_v32 = vsel %vm665_vm3, %v701_v9, %v702_v10 }
  0xb4   : > { %906 = vrot.lane.b32.xlu0 %v2575_v20, %s2262_s9  ;;  %2071 = vmatmul.mubr.msk.bf16.vlgmr.msra.gmra.mxu0 %vm1270_vm14, %v1221_v34  ;;  %v360_v46 = vrot.slane %v358_v38, 7 }
  0xb5   : > { %v769_v36 = vpop.permute.xlu1 %768 }
  0xb6   : > { %v767_v39 = vpop.permute.xlu0 %766  ;;  %v1027_v16 = vsel %vm1019_vm7, %v994_v30, %v769_v36  ;;  %v363_v57 = vor.u32 %v361_v50, %v360_v46 }
  0xb7   : > { %940 = vrot.lane.b32.xlu1 %v585_v29, %s2265_s12 }
  0xb8   : > { %938 = vrot.lane.b32.xlu0 %v573_v59, %s2265_s12 }
  0xb9   : > { %v801_v40 = vpop.permute.xlu1 %800 }
  0xba   : > { %v799_v45 = vpop.permute.xlu0 %798 }
  0xbb   : > { %750 = vrot.lane.b32.xlu1 %v573_v59, %s2260_s28  ;;  %v356_v59 = vor.u32 %v354_v52, %v353_v51  ;;  %v246_v52 = vld [vmem:[%s2357_s7 + $0xe0] sm:$0xff] }
  0xbc   : > { %970 = vrot.lane.b32.xlu0 %v697_v6, %s2266_s23 }
  0xbd   : > { %v833_v47 = vpop.permute.xlu1 %832  ;;  %v2667_v2 = vsel %vm2365_vm2, 0, %v356_v59 }
  0xbe   : > { %v831_v54 = vpop.permute.xlu0 %830  ;;  %v601_v15 = vshll.u32 %v2667_v2, 16  ;;  %v704_v61 = vrot.slane %v2667_v2, 1 }
  0xbf   : > { %752 = vrot.lane.b32.xlu1 %v585_v29, %s2260_s28 }
  0xc0   : > { %972 = vrot.lane.b32.xlu0 %v700_v26, %s2266_s23  ;;  %v603_v33 = vrot.slane %v601_v15, 1  ;;  %v706_v10 = vsel %vm665_vm3, %v704_v61, %v705_v62 }
  0xc1   : > { %v865_v58 = vpop.permute.xlu1 %864 }
  0xc2   : > { %v863_v60 = vpop.permute.xlu0 %862 }
  0xc3   : > { %784 = vrot.lane.b32.xlu1 %v700_v26, %s2259_s27 }
  0xc4   : > { %782 = vrot.lane.b32.xlu0 %v697_v6, %s2259_s27  ;;  %v992_v6 = vsel %vm986_vm6, %v2373_v25, %v2625_v13  ;;  %v599_v25 = vshrl.u32 %v2667_v2, 16  ;;  %v606_v13 = vshll.u32 %v441_v14, 16 }
  0xc5   : > { %v897_v63 = vpop.permute.xlu1 %896  ;;  %v1025_v17 = vsel %vm1019_vm7, %v992_v6, %v767_v39  ;;  %v1060_v39 = vsel %vm1052_vm8, %v1027_v16, %v801_v40  ;;  %v442_v6 = vsel %vm2365_vm2, %v360_v46, 0  ;;  %v248_v16 = vld [vmem:[%s2357_s7 + $0xf0] sm:$0xff] }
  0xc6   : > { %v895_v3 = vpop.permute.xlu0 %894  ;;  %v1058_v21 = vsel %vm1052_vm8, %v1025_v17, %v799_v45  ;;  %v1093_v23 = vsel %vm1085_vm9, %v1060_v39, %v833_v47  ;;  %v604_v42 = vor.u32 %v603_v33, %v599_v25  ;;  %v608_v44 = vrot.slane %v606_v13, 1 }
  0xc7   : > { %816 = vrot.lane.b32.xlu1 %v2652_v43, %s2261_s8  ;;  %v1091_v24 = vsel %vm1085_vm9, %v1058_v21, %v831_v54  ;;  %v1126_v36 = vsel %vm1118_vm10, %v1093_v23, %v865_v58  ;;  %v247_v54 = vld [vmem:[%s2357_s7 + $0xe8] sm:$0xff]  ;;  %v618_v11 = vshll.u32 %v442_v6, 16  ;;  %v708_v39 = vrot.slane %v442_v6, 1 }
  0xc8   : > { %814 = vrot.lane.b32.xlu0 %v2600_v49, %s2261_s8  ;;  %v1124_v31 = vsel %vm1118_vm10, %v1091_v24, %v863_v60  ;;  %v1159_v40 = vsel %vm1151_vm11, %v1126_v36, %v897_v63  ;;  %v264_v58 = vpack.c.bf16 %v247_v54, %v246_v52  ;;  %v2724_v63 = vsel %vm2365_vm2, 0, %v363_v57 }
  0xc9   : > { %v929_v19 = vpop.permute.xlu1 %928  ;;  %v1157_v34 = vsel %vm1151_vm11, %v1124_v31, %v895_v3  ;;  %v613_v7 = vshll.u32 %v2724_v63, 16  ;;  %v620_v13 = vrot.slane %v618_v11, 1  ;;  %v707_v38 = vrot.slane %v2724_v63, 1 }
  0xca   : > { %v927_v22 = vpop.permute.xlu0 %926  ;;  %v1192_v47 = vsel %vm1184_vm12, %v1159_v40, %v929_v19  ;;  %v365_v3 = vshrl.u32 %v264_v58, 16  ;;  %v368_v14 = vshll.u32 %v264_v58, 16 }
  0xcb   : > { %848 = vrot.lane.b32.xlu1 %v597_v12, %s2264_s11  ;;  %v1190_v41 = vsel %vm1184_vm12, %v1157_v34, %v927_v22  ;;  %v615_v19 = vrot.slane %v613_v7, 1  ;;  %v249_v34 = vld [vmem:[%s2357_s7 + $0xf8] sm:$0xff] }
  0xcc   : > { %846 = vrot.lane.b32.xlu0 %v585_v29, %s2264_s11  ;;  %v367_v15 = vrot.slane %v365_v3, 7 }
  0xcd   : > { %v2696_v37 = vpop.permute.xlu1 %738 }
  0xce   : > { %v959_v28 = vpop.permute.xlu0 %958  ;;  %v370_v22 = vor.u32 %v368_v14, %v367_v15  ;;  %v443_v36 = vsel %vm2365_vm2, %v367_v15, 0 }
  0xcf   : > { %v1223_v29 = vsel %vm1217_vm13, %v1190_v41, %v959_v28  ;;  %880 = vrot.lane.b32.xlu1 %v703_v32, %s2263_s10  ;;  %v630_v52 = vshll.u32 %v443_v36, 16 }
  0xd0   : > { %878 = vrot.lane.b32.xlu0 %v700_v26, %s2263_s10  ;;  %2074 = vmatprep.mubr.msk.bf16.mxu0 %vm1270_vm14, %v1223_v29  ;;  %v609_v26 = vsel %vm445_vm4, %v604_v42, %v608_v44  ;;  %v2739_v31 = vsel %vm2365_vm2, 0, %v370_v22  ;;  %v265_v42 = vpack.c.bf16 %v249_v34, %v248_v16  ;;  %v711_v22 = vrot.slane %v443_v36, 1 }
  0xd1   : > { %v2707_v45 = vpop.permute.xlu1 %740  ;;  %v625_v28 = vshll.u32 %v2739_v31, 16 }
  0xd2   : > { %v961_v51 = vpop.permute.xlu0 %960  ;;  %v998_v50 = vsel %vm986_vm6, %v2447_v27, %v2707_v45  ;;  %v372_v58 = vshrl.u32 %v265_v42, 16  ;;  %v375_v6 = vshll.u32 %v265_v42, 16 }
  0xd3   : > { %v1225_v55 = vsel %vm1217_vm13, %v1192_v47, %v961_v51  ;;  %912 = vrot.lane.b32.xlu1 %v2667_v2, %s2262_s9  ;;  %v627_v51 = vrot.slane %v625_v28, 1 }
  0xd4   : > { %910 = vrot.lane.b32.xlu0 %v2652_v43, %s2262_s9  ;;  %2075 = vmatmul.mubr.msk.bf16.gmra.mxu0 %vm1270_vm14, %v1225_v55  ;;  %v374_v7 = vrot.slane %v372_v58, 7 }
  0xd5   : > { %v773_v56 = vpop.permute.xlu1 %772 }
  0xd6   : > { %v771_v59 = vpop.permute.xlu0 %770  ;;  %v1031_v54 = vsel %vm1019_vm7, %v998_v50, %v773_v56  ;;  %v632_v56 = vrot.slane %v630_v52, 1  ;;  %v444_v16 = vsel %vm2365_vm2, %v374_v7, 0 }
  0xd7   : > { %944 = vrot.lane.b32.xlu1 %v609_v26, %s2265_s12 }
  0xd8   : > { %942 = vrot.lane.b32.xlu0 %v597_v12, %s2265_s12 }
  0xd9   : > { %v805_v60 = vpop.permute.xlu1 %804 }
  0xda   : > { %v803_v5 = vpop.permute.xlu0 %802 }
  0xdb   : > { %754 = vrot.lane.b32.xlu1 %v597_v12, %s2260_s28  ;;  %v611_v12 = vshrl.u32 %v2724_v63, 16 }
  0xdc   : > { %974 = vrot.lane.b32.xlu0 %v703_v32, %s2266_s23 }
  0xdd   : > { %v837_v9 = vpop.permute.xlu1 %836  ;;  %v616_v25 = vor.u32 %v615_v19, %v611_v12  ;;  %v377_v12 = vor.u32 %v375_v6, %v374_v7 }
  0xde   : > { %v835_v17 = vpop.permute.xlu0 %834 }
  0xdf   : > { %756 = vrot.lane.b32.xlu1 %v609_v26, %s2260_s28  ;;  %v621_v41 = vsel %vm445_vm4, %v616_v25, %v620_v13 }
  0xe0   : > { %976 = vrot.lane.b32.xlu0 %v706_v10, %s2266_s23 }
  0xe1   : > { %v869_v21 = vpop.permute.xlu1 %868 }
  0xe2   : > { %v867_v24 = vpop.permute.xlu0 %866 }
  0xe3   : > { %788 = vrot.lane.b32.xlu1 %v706_v10, %s2259_s27 }
  0xe4   : > { %786 = vrot.lane.b32.xlu0 %v703_v32, %s2259_s27  ;;  %v996_v32 = vsel %vm986_vm6, %v2426_v8, %v2696_v37  ;;  %v709_v8 = vsel %vm665_vm3, %v707_v38, %v708_v39  ;;  %v623_v37 = vshrl.u32 %v2739_v31, 16 }
  0xe5   : > { %v901_v30 = vpop.permute.xlu1 %900  ;;  %v1029_v23 = vsel %vm1019_vm7, %v996_v32, %v771_v59  ;;  %v1064_v59 = vsel %vm1052_vm8, %v1031_v54, %v805_v60  ;;  %v721_v32 = vshll.u32 %v444_v16, 16 }
  0xe6   : > { %v899_v33 = vpop.permute.xlu0 %898  ;;  %v1062_v44 = vsel %vm1052_vm8, %v1029_v23, %v803_v5  ;;  %v1097_v3 = vsel %vm1085_vm9, %v1064_v59, %v837_v9 }
  0xe7   : > { %820 = vrot.lane.b32.xlu1 %v2724_v63, %s2261_s8  ;;  %v1095_v46 = vsel %vm1085_vm9, %v1062_v44, %v835_v17  ;;  %v1130_v45 = vsel %vm1118_vm10, %v1097_v3, %v869_v21  ;;  %v710_v21 = vrot.slane %v2739_v31, 1 }
  0xe8   : > { %818 = vrot.lane.b32.xlu0 %v2667_v2, %s2261_s8  ;;  %v1128_v47 = vsel %vm1118_vm10, %v1095_v46, %v867_v24  ;;  %v1163_v5 = vsel %vm1151_vm11, %v1130_v45, %v901_v30  ;;  %v428_v24 = vsel %vm2365_vm2, 0, %v377_v12  ;;  %v728_v46 = vrot.slane %v444_v16, 1 }
  0xe9   : > { %v933_v29 = vpop.permute.xlu1 %932  ;;  %v1161_v55 = vsel %vm1151_vm11, %v1128_v47, %v899_v33  ;;  %v716_v13 = vshll.u32 %v428_v24, 16  ;;  %v712_v33 = vsel %vm665_vm3, %v710_v21, %v711_v22  ;;  %v714_v38 = vshrl.u32 %v428_v24, 16 }
  0xea   : > { %v931_v40 = vpop.permute.xlu0 %930  ;;  %v1196_v15 = vsel %vm1184_vm12, %v1163_v5, %v933_v29  ;;  %v723_v29 = vrot.slane %v721_v32, 1 }
  0xeb   : > { %852 = vrot.lane.b32.xlu1 %v621_v41, %s2264_s11  ;;  %v1194_v61 = vsel %vm1184_vm12, %v1161_v55, %v931_v40  ;;  %v718_v39 = vrot.slane %v716_v13, 1  ;;  %v727_v40 = vrot.slane %v428_v24, 1 }
  0xec   : > { %850 = vrot.lane.b32.xlu0 %v609_v26, %s2264_s11  ;;  %v628_v26 = vor.u32 %v627_v51, %v623_v37 }
  0xed   : > { %v743_v57 = vpop.permute.xlu1 %742  ;;  %v729_v54 = vsel %vm665_vm3, %v727_v40, %v728_v46 }
  0xee   : > { %v963_v62 = vpop.permute.xlu0 %962  ;;  %v1000_v18 = vsel %vm986_vm6, %v2478_v53, %v743_v57 }
  0xef   : > { %v1227_v27 = vsel %vm1217_vm13, %v1194_v61, %v963_v62  ;;  %884 = vrot.lane.b32.xlu1 %v709_v8, %s2263_s10 }
  0xf0   : > { %882 = vrot.lane.b32.xlu0 %v706_v10, %s2263_s10  ;;  %2078 = vmatprep.mubr.msk.bf16.mxu0 %vm1270_vm14, %v1227_v27  ;;  %v633_v10 = vsel %vm445_vm4, %v628_v26, %v632_v56 }
  0xf1   : > { %v745_v60 = vpop.permute.xlu1 %744 }
  0xf2   : > { %v965_v9 = vpop.permute.xlu0 %964  ;;  %v1002_v53 = vsel %vm986_vm6, %v2493_v4, %v745_v60 }
  0xf3   : > { %v1229_v14 = vsel %vm1217_vm13, %v1196_v15, %v965_v9  ;;  %916 = vrot.lane.b32.xlu1 %v2739_v31, %s2262_s9 }
  0xf4   : > { %914 = vrot.lane.b32.xlu0 %v2724_v63, %s2262_s9  ;;  %2079 = vmatmul.mubr.msk.bf16.gmra.mxu0 %vm1270_vm14, %v1229_v14 }
  0xf5   : > { %v777_v17 = vpop.permute.xlu1 %776 }
  0xf6   : > { %v775_v19 = vpop.permute.xlu0 %774  ;;  %v1035_v55 = vsel %vm1019_vm7, %v1002_v53, %v777_v17 }
  0xf7   : > { %948 = vrot.lane.b32.xlu1 %v633_v10, %s2265_s12  ;;  %v1033_v37 = vsel %vm1019_vm7, %v1000_v18, %v775_v19 }
  0xf8   : > { %946 = vrot.lane.b32.xlu0 %v621_v41, %s2265_s12 }
  0xf9   : > { %v809_v11 = vpop.permute.xlu1 %808 }
  0xfa   : > { %v807_v25 = vpop.permute.xlu0 %806  ;;  %v1068_v59 = vsel %vm1052_vm8, %v1035_v55, %v809_v11 }
  0xfb   : > { %758 = vrot.lane.b32.xlu1 %v621_v41, %s2260_s28  ;;  %v719_v41 = vor.u32 %v718_v39, %v714_v38 }
  0xfc   : > { %978 = vrot.lane.b32.xlu0 %v709_v8, %s2266_s23 }
  0xfd   : > { %v841_v30 = vpop.permute.xlu1 %840  ;;  %v724_v44 = vsel %vm445_vm4, %v719_v41, %v723_v29 }
  0xfe   : > { %v839_v34 = vpop.permute.xlu0 %838  ;;  %v1101_v3 = vsel %vm1085_vm9, %v1068_v59, %v841_v30 }
  0xff   : > { %760 = vrot.lane.b32.xlu1 %v633_v10, %s2260_s28 }
 0x100   : > { %980 = vrot.lane.b32.xlu0 %v712_v33, %s2266_s23 }
 0x101   : > { %v873_v28 = vpop.permute.xlu1 %872 }
 0x102   : > { %v871_v23 = vpop.permute.xlu0 %870  ;;  %v1134_v27 = vsel %vm1118_vm10, %v1101_v3, %v873_v28 }
 0x103   : > { %792 = vrot.lane.b32.xlu1 %v712_v33, %s2259_s27 }
 0x104   : > { %790 = vrot.lane.b32.xlu0 %v709_v8, %s2259_s27  ;;  %v1066_v8 = vsel %vm1052_vm8, %v1033_v37, %v807_v25  ;;  %s2012_s27 = sshll.u32 %s2351_s29, 7  ;;  %s3052_s29 = sand.u32 1, %s2248_s16  }
 0x105   : > { %v905_v36 = vpop.permute.xlu1 %904  ;;  %v1099_v51 = vsel %vm1085_vm9, %v1066_v8, %v839_v34  ;;  %s2900_s7 = scalar_lea.vmem %s3138_s2, %s2012_s27  ;;  %s1808_s30 = scalar_lea.sflag [#allocation3], %s3052_s29 }
 0x106   : > { %v903_v42 = vpop.permute.xlu0 %902  ;;  %v1132_v52 = vsel %vm1118_vm10, %v1099_v51, %v871_v23  ;;  %v1167_v45 = vsel %vm1151_vm11, %v1134_v27, %v905_v36  ;;  %s2267_s27 = smov [#allocation2]  }
 0x107   : > { %824 = vrot.lane.b32.xlu1 %v428_v24, %s2261_s8  ;;  %v1165_v57 = vsel %vm1151_vm11, %v1132_v52, %v903_v42  ;;  %s2170_s28 = sshll.u32 %s2267_s27, 4  ;;  %s2171_s28 = int_to_ptr.vmem [resolvable:$false] %s2170_s28 }
 0x108   : > { %822 = vrot.lane.b32.xlu0 %v2739_v31, %s2261_s8  ;;  %s2007_s8 = sshll.u32 %s2315_s19, 4  ;;  %s2172_s6 = scalar_lea.vmem %s2171_s28, 32 }
 0x109   : > { %v937_v50 = vpop.permute.xlu1 %936  ;;  %s3062_s20 = scalar_lea.hbm %s3139_s3, %s2007_s8 }
 0x10a   : > { %v935_v47 = vpop.permute.xlu0 %934  ;;  %v1200_v56 = vsel %vm1184_vm12, %v1167_v45, %v937_v50 }
 0x10b   : > { %856 = vrot.lane.b32.xlu1 %v724_v44, %s2264_s11  ;;  %v1198_v61 = vsel %vm1184_vm12, %v1165_v57, %v935_v47 }
 0x10c   : > { %854 = vrot.lane.b32.xlu0 %v633_v10, %s2264_s11  ;;  %s206_s11 = scalar_lea.vmem [#allocation4], %s3052_s29 }
 0x10d   : > { %v747_v58 = vpop.permute.xlu1 %746 }
 0x10e   : > { %v967_v62 = vpop.permute.xlu0 %966  ;;  %v1004_v11 = vsel %vm986_vm6, %v2524_v35, %v747_v58 }
 0x10f   : > { %v1231_v4 = vsel %vm1217_vm13, %v1198_v61, %v967_v62  ;;  %888 = vrot.lane.b32.xlu1 %v729_v54, %s2263_s10 }
 0x110   : > { %886 = vrot.lane.b32.xlu0 %v712_v33, %s2263_s10  ;;  %2082 = vmatprep.mubr.msk.bf16.mxu0 %vm1270_vm14, %v1231_v4 }
 0x111   : > { %v749_v26 = vpop.permute.xlu1 %748 }
 0x112   : > { %v969_v5 = vpop.permute.xlu0 %968 }
 0x113   : > { %v1233_v60 = vsel %vm1217_vm13, %v1200_v56, %v969_v5  ;;  %920 = vrot.lane.b32.xlu1 %v2258_v0, %s2262_s9 }
 0x114   : > { %918 = vrot.lane.b32.xlu0 %v428_v24, %s2262_s9  ;;  %2083 = vmatmul.mubr.msk.bf16.gmra.mxu0 %vm1270_vm14, %v1233_v60  ;;  %s200_s9 = scalar_lea.vmem [#allocation2], %s3052_s29 }
 0x115   : > { %v781_v7 = vpop.permute.xlu1 %780  ;;  %s1827_s10 = sshll.u32 %s200_s9, 4  ;;  %s3064_s10 = int_to_ptr.vmem [resolvable:$true] %s1827_s10 }
 0x116   : > { %v779_v6 = vpop.permute.xlu0 %778  ;;  %s2166_s5 = scalar_lea.vmem %s3064_s10, 16  ;;  %p2173_p0 = scmp.lt.s32.totalorder %s3064_s10, %s2171_s28 }
 0x117   : > { %952 = vrot.lane.b32.xlu1 %v2343_v1, %s2265_s12  ;;  %v1037_v21 = vsel %vm1019_vm7, %v1004_v11, %v779_v6  ;;  %p2167_p11 = scmp.ne.s32.totalorder %s3064_s10, %s2166_s5  ;;  %p2174_p1 = scmp.lt.s32.totalorder %s2172_s6, %s2166_s5 }
 0x118   : > { %950 = vrot.lane.b32.xlu0 %v724_v44, %s2265_s12  ;;  %s1840_s12 = sshll.u32 %s206_s11, 4  ;;  %s3072_s12 = int_to_ptr.vmem [resolvable:$true] %s1840_s12 }
 0x119   : > { %v813_v15 = vpop.permute.xlu1 %812  ;;  %p2168_p12 = pnand %p2167_p11, %p2332_p5  ;;  %p2175_p2 = por %p2174_p1, %p2173_p0 }
 0x11a   : > { %v811_v9 = vpop.permute.xlu0 %810 }
 0x11b   : > { %984 = vrot.lane.b32.xlu1 %v2343_v1, %s2266_s23  ;;  %v1070_v24 = vsel %vm1052_vm8, %v1037_v21, %v811_v9  ;;  %v1006_v1 = vsel %vm986_vm6, %v2539_v48, %v749_v26  ;;  %p2169_p13 = pneg %p2168_p12 }
 0x11c   : > { %982 = vrot.lane.b32.xlu0 %v729_v54, %s2266_s23  ;;  %v1039_v33 = vsel %vm1019_vm7, %v1006_v1, %v781_v7  ;;  %s3070_s23 = scalar_lea.hbm %s3140_s4, %s2007_s8 }
 0x11d   : > { %v845_v14 = vpop.permute.xlu1 %844  ;;  %v1072_v35 = vsel %vm1052_vm8, %v1039_v33, %v813_v15  ;;  %p2176_p3 = pnand %p2175_p2, %p2169_p13 }
 0x11e   : > { %v843_v0 = vpop.permute.xlu0 %842  ;;  %v1105_v32 = vsel %vm1085_vm9, %v1072_v35, %v845_v14 }
 0x11f   : > { %v1103_v13 = vsel %vm1085_vm9, %v1070_v24, %v843_v0 }
 0x121   : > { %v877_v10 = vpop.permute.xlu1 %876 }
 0x122   : > { %v875_v17 = vpop.permute.xlu0 %874  ;;  %v1138_v23 = vsel %vm1118_vm10, %v1105_v32, %v877_v10 }
 0x123   : > { %v1136_v30 = vsel %vm1118_vm10, %v1103_v13, %v875_v17 }
 0x125   : > { %v909_v12 = vpop.permute.xlu1 %908 }
 0x126   : > { %v907_v19 = vpop.permute.xlu0 %906  ;;  %v1171_v48 = vsel %vm1151_vm11, %v1138_v23, %v909_v12 }
 0x127   : > { %v1169_v16 = vsel %vm1151_vm11, %v1136_v30, %v907_v19 }
 0x129   : > { %v941_v22 = vpop.permute.xlu1 %940 }
 0x12a   : > { %v939_v25 = vpop.permute.xlu0 %938  ;;  %v1204_v29 = vsel %vm1184_vm12, %v1171_v48, %v941_v22 }
 0x12b   : > { %v1202_v38 = vsel %vm1184_vm12, %v1169_v16, %v939_v25 }
 0x12d   : > { %v751_v34 = vpop.permute.xlu1 %750 }
 0x12e   : > { %v971_v39 = vpop.permute.xlu0 %970  ;;  %v1008_v52 = vsel %vm986_vm6, %v2575_v20, %v751_v34 }
 0x12f   : > { %v1235_v28 = vsel %vm1217_vm13, %v1202_v38, %v971_v39 }
 0x130   : > { %2086 = vmatprep.mubr.msk.bf16.mxu1 %vm1270_vm14, %v1235_v28 }
 0x131   : > { %v753_v41 = vpop.permute.xlu1 %752 }
 0x132   : > { %v973_v36 = vpop.permute.xlu0 %972  ;;  %v1010_v61 = vsel %vm986_vm6, %v2600_v49, %v753_v41 }
 0x133   : > { %v1237_v42 = vsel %vm1217_vm13, %v1204_v29, %v973_v36 }
 0x134   : > { %2087 = vmatmul.mubr.msk.bf16.vlgmr.msra.gmra.mxu1 %vm1270_vm14, %v1237_v42 }
 0x135   : > { %v785_v18 = vpop.permute.xlu1 %784 }
 0x136   : > { %v783_v44 = vpop.permute.xlu0 %782  ;;  %v1043_v3 = vsel %vm1019_vm7, %v1010_v61, %v785_v18 }
 0x137   : > { %v1041_v54 = vsel %vm1019_vm7, %v1008_v52, %v783_v44 }
 0x139   : > { %v817_v40 = vpop.permute.xlu1 %816 }
 0x13a   : > { %v815_v46 = vpop.permute.xlu0 %814  ;;  %v1076_v20 = vsel %vm1052_vm8, %v1043_v3, %v817_v40 }
 0x13b   : > { %v1074_v57 = vsel %vm1052_vm8, %v1041_v54, %v815_v46 }
 0x13d   : > { %v849_v37 = vpop.permute.xlu1 %848 }
 0x13e   : > { %v847_v50 = vpop.permute.xlu0 %846  ;;  %v1109_v56 = vsel %vm1085_vm9, %v1076_v20, %v849_v37 }
 0x13f   : > { %v1107_v59 = vsel %vm1085_vm9, %v1074_v57, %v847_v50 }
 0x141   : > { %v881_v8 = vpop.permute.xlu1 %880 }
 0x142   : > { %v879_v47 = vpop.permute.xlu0 %878  ;;  %v1142_v60 = vsel %vm1118_vm10, %v1109_v56, %v881_v8 }
 0x143   : > { %v1140_v62 = vsel %vm1118_vm10, %v1107_v59, %v879_v47 }
 0x145   : > { %v913_v51 = vpop.permute.xlu1 %912 }
 0x146   : > { %v911_v53 = vpop.permute.xlu0 %910  ;;  %v1175_v49 = vsel %vm1151_vm11, %v1142_v60, %v913_v51 }
 0x147   : > { %v1173_v4 = vsel %vm1151_vm11, %v1140_v62, %v911_v53 }
 0x149   : > { %v945_v55 = vpop.permute.xlu1 %944 }
 0x14a   : > { %v943_v58 = vpop.permute.xlu0 %942  ;;  %v1208_v6 = vsel %vm1184_vm12, %v1175_v49, %v945_v55 }
 0x14b   : > { %v1206_v45 = vsel %vm1184_vm12, %v1173_v4, %v943_v58 }
 0x14d   : > { %v755_v27 = vpop.permute.xlu1 %754 }
 0x14e   : > { %v975_v26 = vpop.permute.xlu0 %974  ;;  %v1012_v25 = vsel %vm986_vm6, %v2652_v43, %v755_v27 }
 0x14f   : > { %v1239_v5 = vsel %vm1217_vm13, %v1206_v45, %v975_v26 }
 0x150   : > { %2090 = vmatprep.mubr.msk.bf16.mxu1 %vm1270_vm14, %v1239_v5 }
 0x151   : > { %v757_v7 = vpop.permute.xlu1 %756 }
 0x152   : > { %v977_v15 = vpop.permute.xlu0 %976  ;;  %v1014_v34 = vsel %vm986_vm6, %v2667_v2, %v757_v7 }
 0x153   : > { %v1241_v9 = vsel %vm1217_vm13, %v1208_v6, %v977_v15 }
 0x154   : > { %2091 = vmatmul.mubr.msk.bf16.gmra.mxu1 %vm1270_vm14, %v1241_v9 }
 0x155   : > { %v789_v14 = vpop.permute.xlu1 %788 }
 0x156   : > { %v787_v0 = vpop.permute.xlu0 %786  ;;  %v1047_v38 = vsel %vm1019_vm7, %v1014_v34, %v789_v14 }
 0x157   : > { %v1045_v13 = vsel %vm1019_vm7, %v1012_v25, %v787_v0 }
 0x159   : > { %v821_v10 = vpop.permute.xlu1 %820 }
 0x15a   : > { %v819_v17 = vpop.permute.xlu0 %818  ;;  %v1080_v43 = vsel %vm1052_vm8, %v1047_v38, %v821_v10 }
 0x15b   : > { %v1078_v30 = vsel %vm1052_vm8, %v1045_v13, %v819_v17 }
 0x15d   : > { %v853_v12 = vpop.permute.xlu1 %852 }
 0x15e   : > { %v851_v19 = vpop.permute.xlu0 %850  ;;  %v1113_v48 = vsel %vm1085_vm9, %v1080_v43, %v853_v12 }
 0x15f   : > { %v1111_v16 = vsel %vm1085_vm9, %v1078_v30, %v851_v19 }
 0x161   : > { %v885_v11 = vpop.permute.xlu1 %884 }
 0x162   : > { %v883_v21 = vpop.permute.xlu0 %882  ;;  %v1146_v29 = vsel %vm1118_vm10, %v1113_v48, %v885_v11 }
 0x163   : > { %v1144_v35 = vsel %vm1118_vm10, %v1111_v16, %v883_v21 }
 0x165   : > { %v917_v22 = vpop.permute.xlu1 %916 }
 0x166   : > { %v915_v24 = vpop.permute.xlu0 %914  ;;  %v1179_v2 = vsel %vm1151_vm11, %v1146_v29, %v917_v22 }
 0x167   : > { %v1177_v39 = vsel %vm1151_vm11, %v1144_v35, %v915_v24 }
 0x169   : > { %v949_v1 = vpop.permute.xlu1 %948 }
 0x16a   : > { %v947_v33 = vpop.permute.xlu0 %946  ;;  %v1212_v42 = vsel %vm1184_vm12, %v1179_v2, %v949_v1 }
 0x16b   : > { %v1210_v28 = vsel %vm1184_vm12, %v1177_v39, %v947_v33 }
 0x16d   : > { %v759_v32 = vpop.permute.xlu1 %758 }
 0x16e   : > { %v979_v23 = vpop.permute.xlu0 %978  ;;  %v1016_v21 = vsel %vm986_vm6, %v2724_v63, %v759_v32 }
 0x16f   : > { %v1243_v41 = vsel %vm1217_vm13, %v1210_v28, %v979_v23 }
 0x170   : > { %2094 = vmatprep.mubr.msk.bf16.mxu1 %vm1270_vm14, %v1243_v41 }
 0x171   : > { %v761_v36 = vpop.permute.xlu1 %760 }
 0x172   : > { %v981_v18 = vpop.permute.xlu0 %980  ;;  %v1018_v11 = vsel %vm986_vm6, %v2739_v31, %v761_v36 }
 0x173   : > { %v1245_v44 = vsel %vm1217_vm13, %v1212_v42, %v981_v18 }
 0x174   : > { %v2072_v40 = vpop.f32.mrf.mxu0  ;;  %2095 = vmatmul.mubr.msk.bf16.gmra.mxu1 %vm1270_vm14, %v1245_v44 }
 0x175   : > { %v2015_v46 = vpack.c.bf16 %v2072_v40, %v2072_v40  ;;  %v793_v37 = vpop.permute.xlu1 %792  ;;  %v1702_v55 = vmul.f32 %v2072_v40, %v2072_v40  ;;  %v1632_v27 = vsel %vm986_vm6, %v2072_v40, 0.0 }
 0x176   : > { %v1341_v50 = vpop.f32.mrf.mxu0  ;;  %v791_v8 = vpop.permute.xlu0 %790  ;;  %v1051_v22 = vsel %vm1019_vm7, %v1018_v11, %v793_v37 }
 0x177   : > { %1599 = vst.msk [vmem:[%s2900_s7 + $0x8] sm:$0xf] %vm1596_vm15, %v2015_v46  ;;  %v2013_v47 = vpack.c.bf16 %v1341_v50, %v1341_v50  ;;  %v1700_v53 = vmul.f32 %v1341_v50, %v1341_v50  ;;  %v1629_v59 = vsel %vm986_vm6, %v1341_v50, 0.0  ;;  %v1735_v7 = vsel %vm986_vm6, %v1702_v55, 0.0 }
 0x178   : > { %v2073_v51 = vpop.f32.mrf.mxu0  ;;  %v1049_v24 = vsel %vm1019_vm7, %v1016_v21, %v791_v8 }
 0x179   : > { %1597 = vst.msk [vmem:[%s2900_s7] sm:$0xf] %vm1596_vm15, %v2013_v47  ;;  %v2016_v52 = vpack.c.bf16 %v2073_v51, %v2073_v51  ;;  %v825_v54 = vpop.permute.xlu1 %824  ;;  %v1732_v20 = vsel %vm986_vm6, %v1700_v53, 0.0  ;;  %v1703_v45 = vmul.f32 %v2073_v51, %v2073_v51  ;;  %v1634_v6 = vsel %vm986_vm6, %v2073_v51, 0.0 }
 0x17a   : > { %v1344_v57 = vpop.f32.mrf.mxu0  ;;  %v823_v58 = vpop.permute.xlu0 %822  ;;  %v1084_v25 = vsel %vm1052_vm8, %v1051_v22, %v825_v54 }
 0x17b   : > { %1600 = vst.msk [vmem:[%s2900_s7 + $0xc] sm:$0xf] %vm1596_vm15, %v2016_v52  ;;  %v2014_v61 = vpack.c.bf16 %v1344_v57, %v1344_v57  ;;  %v1630_v62 = vsel %vm986_vm6, %v1344_v57, 0.0  ;;  %v1701_v3 = vmul.f32 %v1344_v57, %v1344_v57  ;;  %v1737_v14 = vsel %vm986_vm6, %v1703_v45, 0.0 }
 0x17c   : > { %v1631_v4 = vadd.f32 %v1630_v62, %v1629_v59  ;;  %v1082_v1 = vsel %vm1052_vm8, %v1049_v24, %v823_v58 }
 0x17d   : > { %1598 = vst.msk [vmem:[%s2900_s7 + $0x4] sm:$0xf] %vm1596_vm15, %v2014_v61  ;;  %v1733_v26 = vsel %vm986_vm6, %v1701_v3, 0.0  ;;  %v857_v56 = vpop.permute.xlu1 %856 }
 0x17e   : > { %v1633_v5 = vadd.f32 %v1632_v27, %v1631_v4  ;;  %v1734_v60 = vadd.f32 %v1733_v26, %v1732_v20  ;;  %v855_v49 = vpop.permute.xlu0 %854  ;;  %v1117_v30 = vsel %vm1085_vm9, %v1084_v25, %v857_v56 }
 0x17f   : > { %v1115_v16 = vsel %vm1085_vm9, %v1082_v1, %v855_v49 }
 0x180   : > { %v1736_v15 = vadd.f32 %v1735_v7, %v1734_v60  ;;  %v1635_v9 = vadd.f32 %v1634_v6, %v1633_v5 }
 0x181   : > { %v889_v0 = vpop.permute.xlu1 %888 }
 0x182   : > { %v887_v10 = vpop.permute.xlu0 %886  ;;  %v1738_v17 = vadd.f32 %v1737_v14, %v1736_v15  ;;  %v1150_v31 = vsel %vm1118_vm10, %v1117_v30, %v889_v0 }
 0x183   : > { %v1148_v34 = vsel %vm1118_vm10, %v1115_v16, %v887_v10 }
 0x185   : > { %v921_v12 = vpop.permute.xlu1 %920 }
 0x186   : > { %v919_v19 = vpop.permute.xlu0 %918  ;;  %v1183_v63 = vsel %vm1151_vm11, %v1150_v31, %v921_v12 }
 0x187   : > { %v1181_v35 = vsel %vm1151_vm11, %v1148_v34, %v919_v19 }
 0x189   : > { %v953_v13 = vpop.permute.xlu1 %952 }
 0x18a   : > { %v951_v33 = vpop.permute.xlu0 %950  ;;  %v1216_v38 = vsel %vm1184_vm12, %v1183_v63, %v953_v13 }
 0x18b   : > { %v1214_v32 = vsel %vm1184_vm12, %v1181_v35, %v951_v33 }
 0x18d   : > { %v985_v39 = vpop.permute.xlu1 %984 }
 0x18e   : > { %v1249_v43 = vsel %vm1217_vm13, %v1216_v38, %v985_v39  ;;  %v983_v28 = vpop.permute.xlu0 %982 }
 0x18f   : > { %v1247_v23 = vsel %vm1217_vm13, %v1214_v32, %v983_v28 }
 0x190   : > { %2098 = vmatprep.mubr.msk.bf16.mxu1 %vm1270_vm14, %v1247_v23 }
 0x191   : > { %2099 = vmatmul.mubr.msk.bf16.gmra.mxu1 %vm1270_vm14, %v1249_v43 }
 0x194   : > { %v2076_v48 = vpop.f32.mrf.mxu0 }
 0x195   : > { %v2019_v41 = vpack.c.bf16 %v2076_v48, %v2076_v48  ;;  %v1706_v8 = vmul.f32 %v2076_v48, %v2076_v48  ;;  %v1640_v54 = vsel %vm986_vm6, %v2076_v48, 0.0 }
 0x196   : > { %v1357_v29 = vpop.f32.mrf.mxu0 }
 0x197   : > { %1603 = vst.msk [vmem:[%s2900_s7 + $0x18] sm:$0xf] %vm1596_vm15, %v2019_v41  ;;  %v2017_v2 = vpack.c.bf16 %v1357_v29, %v1357_v29  ;;  %v1636_v36 = vsel %vm986_vm6, %v1357_v29, 0.0  ;;  %v1704_v42 = vmul.f32 %v1357_v29, %v1357_v29  ;;  %v1743_v61 = vsel %vm986_vm6, %v1706_v8, 0.0 }
 0x198   : > { %v1637_v18 = vadd.f32 %v1636_v36, %v1635_v9  ;;  %v2077_v44 = vpop.f32.mrf.mxu0 }
 0x199   : > { %1601 = vst.msk [vmem:[%s2900_s7 + $0x10] sm:$0xf] %vm1596_vm15, %v2017_v2  ;;  %v1739_v40 = vsel %vm986_vm6, %v1704_v42, 0.0  ;;  %v2020_v46 = vpack.c.bf16 %v2077_v44, %v2077_v44  ;;  %v1707_v55 = vmul.f32 %v2077_v44, %v2077_v44  ;;  %v1642_v62 = vsel %vm986_vm6, %v2077_v44, 0.0 }
 0x19a   : > { %v1740_v37 = vadd.f32 %v1739_v40, %v1738_v17  ;;  %v1360_v50 = vpop.f32.mrf.mxu0 }
 0x19b   : > { %1604 = vst.msk [vmem:[%s2900_s7 + $0x1c] sm:$0xf] %vm1596_vm15, %v2020_v46  ;;  %v2018_v47 = vpack.c.bf16 %v1360_v50, %v1360_v50  ;;  %v1638_v51 = vsel %vm986_vm6, %v1360_v50, 0.0  ;;  %v1705_v53 = vmul.f32 %v1360_v50, %v1360_v50  ;;  %v1745_v27 = vsel %vm986_vm6, %v1707_v55, 0.0 }
 0x19c   : > { %v1639_v52 = vadd.f32 %v1638_v51, %v1637_v18 }
 0x19d   : > { %1602 = vst.msk [vmem:[%s2900_s7 + $0x14] sm:$0xf] %vm1596_vm15, %v2018_v47  ;;  %v1741_v57 = vsel %vm986_vm6, %v1705_v53, 0.0 }
 0x19e   : > { %v1641_v58 = vadd.f32 %v1640_v54, %v1639_v52  ;;  %v1742_v59 = vadd.f32 %v1741_v57, %v1740_v37 }
 0x1a0   : > { %v1744_v3 = vadd.f32 %v1743_v61, %v1742_v59  ;;  %v1643_v4 = vadd.f32 %v1642_v62, %v1641_v58 }
 0x1a2   : > { %v1746_v20 = vadd.f32 %v1745_v27, %v1744_v3 }
 0x1b4   : > { %v2080_v45 = vpop.f32.mrf.mxu0 }
 0x1b5   : > { %v2023_v26 = vpack.c.bf16 %v2080_v45, %v2080_v45  ;;  %v1710_v10 = vmul.f32 %v2080_v45, %v2080_v45  ;;  %v1648_v21 = vsel %vm986_vm6, %v2080_v45, 0.0 }
 0x1b6   : > { %v1373_v56 = vpop.f32.mrf.mxu0 }
 0x1b7   : > { %1607 = vst.msk [vmem:[%s2900_s7 + $0x28] sm:$0xf] %vm1596_vm15, %v2023_v26  ;;  %v2021_v5 = vpack.c.bf16 %v1373_v56, %v1373_v56  ;;  %v1644_v60 = vsel %vm986_vm6, %v1373_v56, 0.0  ;;  %v1708_v49 = vmul.f32 %v1373_v56, %v1373_v56  ;;  %v1751_v1 = vsel %vm986_vm6, %v1710_v10, 0.0 }
 0x1b8   : > { %v1645_v7 = vadd.f32 %v1644_v60, %v1643_v4  ;;  %v2081_v6 = vpop.f32.mrf.mxu0 }
 0x1b9   : > { %1605 = vst.msk [vmem:[%s2900_s7 + $0x20] sm:$0xf] %vm1596_vm15, %v2021_v5  ;;  %v1747_v15 = vsel %vm986_vm6, %v1708_v49, 0.0  ;;  %v2024_v9 = vpack.c.bf16 %v2081_v6, %v2081_v6  ;;  %v1711_v22 = vmul.f32 %v2081_v6, %v2081_v6  ;;  %v1650_v30 = vsel %vm986_vm6, %v2081_v6, 0.0 }
 0x1ba   : > { %v1748_v14 = vadd.f32 %v1747_v15, %v1746_v20  ;;  %v1376_v0 = vpop.f32.mrf.mxu0 }
 0x1bb   : > { %1608 = vst.msk [vmem:[%s2900_s7 + $0x2c] sm:$0xf] %vm1596_vm15, %v2024_v9  ;;  %v2022_v17 = vpack.c.bf16 %v1376_v0, %v1376_v0  ;;  %v1646_v12 = vsel %vm986_vm6, %v1376_v0, 0.0  ;;  %v1709_v19 = vmul.f32 %v1376_v0, %v1376_v0  ;;  %v1753_v31 = vsel %vm986_vm6, %v1711_v22, 0.0 }
 0x1bc   : > { %v1647_v11 = vadd.f32 %v1646_v12, %v1645_v7 }
 0x1bd   : > { %1606 = vst.msk [vmem:[%s2900_s7 + $0x24] sm:$0xf] %vm1596_vm15, %v2022_v17  ;;  %v1749_v24 = vsel %vm986_vm6, %v1709_v19, 0.0 }
 0x1be   : > { %v1649_v25 = vadd.f32 %v1648_v21, %v1647_v11  ;;  %v1750_v13 = vadd.f32 %v1749_v24, %v1748_v14 }
 0x1c0   : > { %v1752_v33 = vadd.f32 %v1751_v1, %v1750_v13  ;;  %v1651_v16 = vadd.f32 %v1650_v30, %v1649_v25 }
 0x1c2   : > { %v1754_v34 = vadd.f32 %v1753_v31, %v1752_v33 }
 0x1d4   : > { %v2084_v63 = vpop.f32.mrf.mxu0 }
 0x1d5   : > { %v2027_v35 = vpack.c.bf16 %v2084_v63, %v2084_v63  ;;  %v1714_v36 = vmul.f32 %v2084_v63, %v2084_v63  ;;  %v1656_v46 = vsel %vm986_vm6, %v2084_v63, 0.0 }
 0x1d6   : > { %v1389_v38 = vpop.f32.mrf.mxu0 }
 0x1d7   : > { %1611 = vst.msk [vmem:[%s2900_s7 + $0x38] sm:$0xf] %vm1596_vm15, %v2027_v35  ;;  %v2025_v39 = vpack.c.bf16 %v1389_v38, %v1389_v38  ;;  %v1652_v32 = vsel %vm986_vm6, %v1389_v38, 0.0  ;;  %v1712_v43 = vmul.f32 %v1389_v38, %v1389_v38  ;;  %v1759_v51 = vsel %vm986_vm6, %v1714_v36, 0.0 }
 0x1d8   : > { %v1653_v28 = vadd.f32 %v1652_v32, %v1651_v16  ;;  %v2085_v23 = vpop.f32.mrf.mxu0 }
 0x1d9   : > { %1609 = vst.msk [vmem:[%s2900_s7 + $0x30] sm:$0xf] %vm1596_vm15, %v2025_v39  ;;  %v1755_v48 = vsel %vm986_vm6, %v1712_v43, 0.0  ;;  %v2028_v41 = vpack.c.bf16 %v2085_v23, %v2085_v23  ;;  %v1715_v37 = vmul.f32 %v2085_v23, %v2085_v23  ;;  %v1658_v53 = vsel %vm986_vm6, %v2085_v23, 0.0 }
 0x1da   : > { %v1756_v29 = vadd.f32 %v1755_v48, %v1754_v34  ;;  %v1392_v2 = vpop.f32.mrf.mxu0 }
 0x1db   : > { %1612 = vst.msk [vmem:[%s2900_s7 + $0x3c] sm:$0xf] %vm1596_vm15, %v2028_v41  ;;  %v2026_v42 = vpack.c.bf16 %v1392_v2, %v1392_v2  ;;  %v1654_v18 = vsel %vm986_vm6, %v1392_v2, 0.0  ;;  %v1713_v44 = vmul.f32 %v1392_v2, %v1392_v2  ;;  %v1761_v55 = vsel %vm986_vm6, %v1715_v37, 0.0 }
 0x1dc   : > { %v1655_v40 = vadd.f32 %v1654_v18, %v1653_v28 }
 0x1dd   : > { %1610 = vst.msk [vmem:[%s2900_s7 + $0x34] sm:$0xf] %vm1596_vm15, %v2026_v42  ;;  %v1757_v50 = vsel %vm986_vm6, %v1713_v44, 0.0 }
 0x1de   : > { %v1657_v8 = vadd.f32 %v1656_v46, %v1655_v40  ;;  %v1758_v47 = vadd.f32 %v1757_v50, %v1756_v29 }
 0x1e0   : > { %v1760_v52 = vadd.f32 %v1759_v51, %v1758_v47  ;;  %v1659_v54 = vadd.f32 %v1658_v53, %v1657_v8 }
 0x1e2   : > { %v1762_v57 = vadd.f32 %v1761_v55, %v1760_v52 }
 0x1f4   : > { %v2088_v58 = vpop.f32.mrf.mxu1 }
 0x1f5   : > { %v2031_v59 = vpack.c.bf16 %v2088_v58, %v2088_v58  ;;  %v1718_v60 = vmul.f32 %v2088_v58, %v2088_v58  ;;  %v1664_v9 = vsel %vm986_vm6, %v2088_v58, 0.0 }
 0x1f6   : > { %v1405_v61 = vpop.f32.mrf.mxu1 }
 0x1f7   : > { %1615 = vst.msk [vmem:[%s2900_s7 + $0x48] sm:$0xf] %vm1596_vm15, %v2031_v59  ;;  %v2029_v62 = vpack.c.bf16 %v1405_v61, %v1405_v61  ;;  %v1660_v3 = vsel %vm986_vm6, %v1405_v61, 0.0  ;;  %v1716_v4 = vmul.f32 %v1405_v61, %v1405_v61  ;;  %v1767_v12 = vsel %vm986_vm6, %v1718_v60, 0.0 }
 0x1f8   : > { %v1661_v27 = vadd.f32 %v1660_v3, %v1659_v54  ;;  %v2089_v20 = vpop.f32.mrf.mxu1 }
 0x1f9   : > { %1613 = vst.msk [vmem:[%s2900_s7 + $0x40] sm:$0xf] %vm1596_vm15, %v2029_v62  ;;  %v1763_v45 = vsel %vm986_vm6, %v1716_v4, 0.0  ;;  %v2032_v26 = vpack.c.bf16 %v2089_v20, %v2089_v20  ;;  %v1719_v14 = vmul.f32 %v2089_v20, %v2089_v20  ;;  %v1666_v19 = vsel %vm986_vm6, %v2089_v20, 0.0 }
 0x1fa   : > { %v1764_v56 = vadd.f32 %v1763_v45, %v1762_v57  ;;  %v1408_v5 = vpop.f32.mrf.mxu1 }
 0x1fb   : > { %1616 = vst.msk [vmem:[%s2900_s7 + $0x4c] sm:$0xf] %vm1596_vm15, %v2032_v26  ;;  %v2030_v49 = vpack.c.bf16 %v1408_v5, %v1408_v5  ;;  %v1662_v7 = vsel %vm986_vm6, %v1408_v5, 0.0  ;;  %v1717_v6 = vmul.f32 %v1408_v5, %v1408_v5  ;;  %v1769_v22 = vsel %vm986_vm6, %v1719_v14, 0.0 }
 0x1fc   : > { %v1663_v15 = vadd.f32 %v1662_v7, %v1661_v27 }
 0x1fd   : > { %1614 = vst.msk [vmem:[%s2900_s7 + $0x44] sm:$0xf] %vm1596_vm15, %v2030_v49  ;;  %v1765_v0 = vsel %vm986_vm6, %v1717_v6, 0.0 }
 0x1fe   : > { %v1665_v10 = vadd.f32 %v1664_v9, %v1663_v15  ;;  %v1766_v17 = vadd.f32 %v1765_v0, %v1764_v56 }
 0x200   : > { %v1768_v11 = vadd.f32 %v1767_v12, %v1766_v17  ;;  %v1667_v21 = vadd.f32 %v1666_v19, %v1665_v10 }
 0x202   : > { %v1770_v24 = vadd.f32 %v1769_v22, %v1768_v11 }
 0x214   : > { %v2092_v25 = vpop.f32.mrf.mxu1 }
 0x215   : > { %v2035_v13 = vpack.c.bf16 %v2092_v25, %v2092_v25  ;;  %v1722_v46 = vmul.f32 %v2092_v25, %v2092_v25  ;;  %v1672_v50 = vsel %vm986_vm6, %v2092_v25, 0.0 }
 0x216   : > { %v1421_v1 = vpop.f32.mrf.mxu1 }
 0x217   : > { %1619 = vst.msk [vmem:[%s2900_s7 + $0x58] sm:$0xf] %vm1596_vm15, %v2035_v13  ;;  %v2033_v30 = vpack.c.bf16 %v1421_v1, %v1421_v1  ;;  %v1720_v28 = vmul.f32 %v1421_v1, %v1421_v1  ;;  %v1668_v41 = vsel %vm986_vm6, %v1421_v1, 0.0  ;;  %v1775_v47 = vsel %vm986_vm6, %v1722_v46, 0.0 }
 0x218   : > { %v2093_v33 = vpop.f32.mrf.mxu1  ;;  %v1669_v42 = vadd.f32 %v1668_v41, %v1667_v21 }
 0x219   : > { %1617 = vst.msk [vmem:[%s2900_s7 + $0x50] sm:$0xf] %vm1596_vm15, %v2033_v30  ;;  %v2036_v16 = vpack.c.bf16 %v2093_v33, %v2093_v33  ;;  %v1771_v2 = vsel %vm986_vm6, %v1720_v28, 0.0  ;;  %v1723_v51 = vmul.f32 %v2093_v33, %v2093_v33  ;;  %v1674_v54 = vsel %vm986_vm6, %v2093_v33, 0.0 }
 0x21a   : > { %v1424_v31 = vpop.f32.mrf.mxu1  ;;  %v1772_v44 = vadd.f32 %v1771_v2, %v1770_v24 }
 0x21b   : > { %1620 = vst.msk [vmem:[%s2900_s7 + $0x5c] sm:$0xf] %vm1596_vm15, %v2036_v16  ;;  %v2034_v34 = vpack.c.bf16 %v1424_v31, %v1424_v31  ;;  %v1721_v29 = vmul.f32 %v1424_v31, %v1424_v31  ;;  %v1670_v36 = vsel %vm986_vm6, %v1424_v31, 0.0  ;;  %v1777_v59 = vsel %vm986_vm6, %v1723_v51, 0.0 }
 0x21c   : > { %v1671_v40 = vadd.f32 %v1670_v36, %v1669_v42 }
 0x21d   : > { %1618 = vst.msk [vmem:[%s2900_s7 + $0x54] sm:$0xf] %vm1596_vm15, %v2034_v34  ;;  %v1773_v18 = vsel %vm986_vm6, %v1721_v29, 0.0 }
 0x21e   : > { %v1774_v37 = vadd.f32 %v1773_v18, %v1772_v44  ;;  %v1673_v8 = vadd.f32 %v1672_v50, %v1671_v40 }
 0x220   : > { %v1776_v52 = vadd.f32 %v1775_v47, %v1774_v37  ;;  %v1675_v58 = vadd.f32 %v1674_v54, %v1673_v8 }
 0x222   : > { %v1778_v4 = vadd.f32 %v1777_v59, %v1776_v52 }
 0x234   : > { %v2096_v63 = vpop.f32.mrf.mxu1 }
 0x235   : > { %v2039_v35 = vpack.c.bf16 %v2096_v63, %v2096_v63  ;;  %v1726_v26 = vmul.f32 %v2096_v63, %v2096_v63  ;;  %v1680_v5 = vsel %vm986_vm6, %v2096_v63, 0.0 }
 0x236   : > { %v1437_v38 = vpop.f32.mrf.mxu1 }
 0x237   : > { %1623 = vst.msk [vmem:[%s2900_s7 + $0x68] sm:$0xf] %vm1596_vm15, %v2039_v35  ;;  %v2037_v39 = vpack.c.bf16 %v1437_v38, %v1437_v38  ;;  %v1724_v53 = vmul.f32 %v1437_v38, %v1437_v38  ;;  %v1676_v55 = vsel %vm986_vm6, %v1437_v38, 0.0  ;;  %v1783_v7 = vsel %vm986_vm6, %v1726_v26, 0.0 }
 0x238   : > { %v2097_v32 = vpop.f32.mrf.mxu1  ;;  %v1677_v3 = vadd.f32 %v1676_v55, %v1675_v58 }
 0x239   : > { %1621 = vst.msk [vmem:[%s2900_s7 + $0x60] sm:$0xf] %vm1596_vm15, %v2037_v39  ;;  %v2040_v43 = vpack.c.bf16 %v2097_v32, %v2097_v32  ;;  %v1779_v61 = vsel %vm986_vm6, %v1724_v53, 0.0  ;;  %v1727_v6 = vmul.f32 %v2097_v32, %v2097_v32  ;;  %v1682_v0 = vsel %vm986_vm6, %v2097_v32, 0.0 }
 0x23a   : > { %v1440_v23 = vpop.f32.mrf.mxu1  ;;  %v1780_v20 = vadd.f32 %v1779_v61, %v1778_v4 }
 0x23b   : > { %1624 = vst.msk [vmem:[%s2900_s7 + $0x6c] sm:$0xf] %vm1596_vm15, %v2040_v43  ;;  %v2038_v48 = vpack.c.bf16 %v1440_v23, %v1440_v23  ;;  %v1725_v57 = vmul.f32 %v1440_v23, %v1440_v23  ;;  %v1678_v62 = vsel %vm986_vm6, %v1440_v23, 0.0  ;;  %v1785_v21 = vsel %vm986_vm6, %v1727_v6, 0.0 }
 0x23c   : > { %v1679_v45 = vadd.f32 %v1678_v62, %v1677_v3 }
 0x23d   : > { %1622 = vst.msk [vmem:[%s2900_s7 + $0x64] sm:$0xf] %vm1596_vm15, %v2038_v48  ;;  %v1781_v27 = vsel %vm986_vm6, %v1725_v57, 0.0 }
 0x23e   : > { %v1782_v56 = vadd.f32 %v1781_v27, %v1780_v20  ;;  %v1681_v60 = vadd.f32 %v1680_v5, %v1679_v45 }
 0x240   : > { %v1784_v9 = vadd.f32 %v1783_v7, %v1782_v56  ;;  %v1683_v19 = vadd.f32 %v1682_v0, %v1681_v60 }
 0x242   : > { %v1786_v13 = vadd.f32 %v1785_v21, %v1784_v9 }
 0x251   : > { %v2100_v49 = vpop.f32.mrf.mxu1 }
 0x252   : > { %v2043_v15 = vpack.c.bf16 %v2100_v49, %v2100_v49  ;;  %v1730_v30 = vmul.f32 %v2100_v49, %v2100_v49  ;;  %v1688_v35 = vsel %vm986_vm6, %v2100_v49, 0.0 }
 0x253   : > { %v1453_v14 = vpop.f32.mrf.mxu1 }
 0x254   : > { %1627 = vst.msk [vmem:[%s2900_s7 + $0x78] sm:$0xf] %vm1596_vm15, %v2043_v15  ;;  %v2041_v10 = vpack.c.bf16 %v1453_v14, %v1453_v14  ;;  %v1684_v17 = vsel %vm986_vm6, %v1453_v14, 0.0  ;;  %v1728_v12 = vmul.f32 %v1453_v14, %v1453_v14  ;;  %v1791_v28 = vsel %vm986_vm6, %v1730_v30, 0.0 }
 0x255   : > { %v2101_v11 = vpop.f32.mrf.mxu1  ;;  %v1685_v25 = vadd.f32 %v1684_v17, %v1683_v19 }
 0x256   : > { %1625 = vst.msk [vmem:[%s2900_s7 + $0x70] sm:$0xf] %vm1596_vm15, %v2041_v10  ;;  %v1787_v22 = vsel %vm986_vm6, %v1728_v12, 0.0  ;;  %v2044_v24 = vpack.c.bf16 %v2101_v11, %v2101_v11  ;;  %v1731_v38 = vmul.f32 %v2101_v11, %v2101_v11  ;;  %v1690_v23 = vsel %vm986_vm6, %v2101_v11, 0.0 }
 0x257   : > { %v1456_v1 = vpop.f32.mrf.mxu1  ;;  %v1788_v34 = vadd.f32 %v1787_v22, %v1786_v13 }
 0x258   : > { %1628 = vst.msk [vmem:[%s2900_s7 + $0x7c] sm:$0xf] %vm1596_vm15, %v2044_v24  ;;  %v2042_v33 = vpack.c.bf16 %v1456_v1, %v1456_v1  ;;  %v1686_v16 = vsel %vm986_vm6, %v1456_v1, 0.0  ;;  %v1729_v31 = vmul.f32 %v1456_v1, %v1456_v1  ;;  %v1793_v29 = vsel %vm986_vm6, %v1731_v38, 0.0 }
 0x259   : > { %v1687_v63 = vadd.f32 %v1686_v16, %v1685_v25 }
 0x25a   : > { %1626 = vst.msk [vmem:[%s2900_s7 + $0x74] sm:$0xf] %vm1596_vm15, %v2042_v33  ;;  %v1789_v39 = vsel %vm986_vm6, %v1729_v31, 0.0 }
 0x25b   : > { %v1689_v32 = vadd.f32 %v1688_v35, %v1687_v63  ;;  %v1790_v43 = vadd.f32 %v1789_v39, %v1788_v34 }
 0x25d   : > { %v1691_v48 = vadd.f32 %v1690_v23, %v1689_v32  ;;  %v1792_v41 = vadd.f32 %v1791_v28, %v1790_v43 }
 0x25f   : > { %v1692_v2 = vrot.slane %v1691_v48, 4  ;;  %v1794_v36 = vadd.f32 %v1793_v29, %v1792_v41 }
 0x261   : > { %v1693_v42 = vadd.f32 %v1692_v2, %v1691_v48  ;;  %v1795_v18 = vrot.slane %v1794_v36, 4 }
 0x263   : > { %v1694_v44 = vrot.slane %v1693_v42, 2  ;;  %v1796_v40 = vadd.f32 %v1795_v18, %v1794_v36 }
 0x265   : > { %v1695_v46 = vadd.f32 %v1694_v44, %v1693_v42  ;;  %v1797_v37 = vrot.slane %v1796_v40, 2 }
 0x267   : > { %v1696_v50 = vrot.slane %v1695_v46, 1  ;;  %v1798_v8 = vadd.f32 %v1797_v37, %v1796_v40 }
 0x269   : > { %v1697_v47 = vadd.f32 %v1696_v50, %v1695_v46  ;;  %v1799_v51 = vrot.slane %v1798_v8, 1 }
 0x26b   : > { %1699 = vst.msk [vmem:[%s200_s9] sm:$0x1] %vm1698_vm0, %v1697_v47  ;;  %v1800_v53 = vadd.f32 %v1799_v51, %v1798_v8 }
 0x26c   : > { %2179 = shalt.err (!%p2176_p3)
}
 0x26d   : > { %s2180_s7 = scalar_lea.hbm %s3062_s20, 16  ;;  %s2184_s13 = scalar_lea.hbm %s3139_s3, 32 }
 0x26e   : > { %p2181_p4 = scmp.ne.s32.totalorder %s3062_s20, %s2180_s7  ;;  %p2185_p9 = scmp.lt.s32.totalorder %s3062_s20, %s3139_s3 }
 0x26f   : > { %p2186_p10 = scmp.lt.s32.totalorder %s2184_s13, %s2180_s7 }
 0x270   : > { %p2182_p7 = pnand %p2181_p4, %p2332_p5 }
 0x271   : > { %p2187_p11 = por %p2186_p10, %p2185_p9 }
 0x272   : > { %p2183_p8 = pneg %p2182_p7 }
 0x274   : > { %p2188_p12 = pnand %p2187_p11, %p2183_p8 }
 0x276   : > { %2191 = shalt.err (!%p2188_p12)
}
 0x277   : > { %2110 = dma.vmem_to_hbm [thread:$0]  (%p2332_p5), %s3064_s10, 16, %s3062_s20, %s1808_s30   ;;  %1801 = vst.msk [vmem:[%s206_s11] sm:$0x1] %vm1698_vm0, %v1800_v53 }
 0x278   : > { %s1812_s22 = scalar_lea.sflag [#allocation5], %s3052_s29  ;;  %s2192_s5 = scalar_lea.vmem %s3072_s12, 16 }
 0x279   : > { %p2193_p13 = scmp.ne.s32.totalorder %s3072_s12, %s2192_s5  ;;  %s2268_s27 = smov [#allocation4]  }
 0x27a   : > { %s2196_s28 = sshll.u32 %s2268_s27, 4  ;;  %s2197_s28 = int_to_ptr.vmem [resolvable:$false] %s2196_s28 }
 0x27b   : > { %p2194_p0 = pnand %p2193_p13, %p2332_p5  ;;  %s2198_s6 = scalar_lea.vmem %s2197_s28, 32 }
 0x27c   : > { %p2199_p2 = scmp.lt.s32.totalorder %s3072_s12, %s2197_s28  ;;  %p2200_p3 = scmp.lt.s32.totalorder %s2198_s6, %s2192_s5 }
 0x27d   : > { %p2195_p1 = pneg %p2194_p0 }
 0x27e   : > { %p2201_p4 = por %p2200_p3, %p2199_p2 }
 0x280   : > { %p2202_p7 = pnand %p2201_p4, %p2195_p1 }
 0x282   : > { %2205 = shalt.err (!%p2202_p7)
}
 0x283   : > { %s2206_s10 = scalar_lea.hbm %s3070_s23, 16  ;;  %s2210_s20 = scalar_lea.hbm %s3140_s4, 32 }
 0x284   : > { %p2207_p8 = scmp.ne.s32.totalorder %s3070_s23, %s2206_s10  ;;  %p2211_p11 = scmp.lt.s32.totalorder %s3070_s23, %s3140_s4 }
 0x285   : > { %p2212_p12 = scmp.lt.s32.totalorder %s2210_s20, %s2206_s10 }
 0x286   : > { %p2208_p9 = pnand %p2207_p8, %p2332_p5 }
 0x287   : > { %p2213_p13 = por %p2212_p12, %p2211_p11 }
 0x288   : > { %p2209_p10 = pneg %p2208_p9 }
 0x28a   : > { %p2214_p0 = pnand %p2213_p13, %p2209_p10 }
 0x28c   : > { %2217 = shalt.err (!%p2214_p0)
}
 0x28d   : > { %2111 = dma.vmem_to_hbm [thread:$0]  (%p2332_p5), %s3072_s12, 16, %s3070_s23, %s1812_s22  }
 0x28e PF: > { %p2121_p1 = scmp.ge.s32.totalorder %s2256_s18, 2  ;;  %s1860_s8 = sand.u32 1, %s2244_s15  }
 0x28f   : > { %s1861_s9 = scalar_lea.sflag [#allocation3], %s1860_s8 }
 0x290   : > { %p2115_p2 = pnand %p2121_p1, %p2336_p6 }
 0x292   : > { %p2116_p3 = pneg %p2115_p2 }
 0x294   : > { %2235 = dma.done.wait (%p2116_p3), %s1861_s9, 16  }
 0x295   : > { %2237 = vsyncadd (%p2116_p3), %s1861_s9, 4294967280  ;;  %s1869_s13 = scalar_lea.sflag [#allocation5], %s1860_s8 }
 0x296   : > { %2239 = dma.done.wait (%p2116_p3), %s1869_s13, 16  }
 0x297   : > { %2241 = vsyncadd (%p2116_p3), %s1869_s13, 4294967280  ;;  %p18_p5 = scmp.ge.s32.totalorder %s2319_s21, 4   ;;  %s3145_s15 = smov %s2248_s16 }
 0x298   : > { %s3146_s16 = smov %s2252_s17  ;;  %s3147_s17 = smov %s2330_s24 }
 0x299   : > { %s3148_s18 = smov %s2319_s21  ;;  %20 = sbr.rel (!%p18_p5) target bundleno = 5 (0x5), region = 92 }
 0x29e   :  { %1873 = vsyncpa [#allocation3], 1 }
 0x29f   :  { %1875 = vsyncpa [#allocation3 + $0x1], 1 }
 0x2a0   :  { %1876 = vsyncpa [#allocation5], 1 }
 0x2a1   :  { %1878 = vsyncpa [#allocation5 + $0x1], 1 }

</bundles_post_ra>
